<compile_context>
chip_gen: v6e
topology: v6e:2x2x1
jax: 0.10.0
libtpu: 0.0.40
codegen_flags: <defaults>
</compile_context>

<pallas_src>
import jax
import jax.numpy as jnp
from jax.experimental import pallas as pl
from jax.experimental.pallas import tpu as pltpu

HIDDEN_SIZE = 128
INPUT_SIZE = 1
OUTPUT_SIZE = 1


def _sigmoid_via_tanh(x):
    # 1 EUP op (tanh) + cheap VPU fma, instead of exp + full-precision divide.
    return 0.5 * (jnp.tanh(0.5 * x) + 1.0)


def lstm_fused_kernel(x_ref, wrow_ref, bias_ref, whh_ref, wfc_ref, bfc_ref, out_ref):
    """Fully fused LSTM forward: input projection + recurrence + final FC.

    x_ref    : (T, B, 1) f32   raw inputs (I == 1)
    wrow_ref : (1, 4H)   f32   w_ih[:, 0] as a row vector
    bias_ref : (1, 4H)   f32   b_ih + b_hh
    whh_ref  : (H, 4H)   bf16  recurrent weights, pre-transposed
    wfc_ref  : (1, H)    f32   FC weight row
    bfc_ref  : (1, 1)    f32   FC bias
    out_ref  : (B, 1)    f32   fc(h_T)
    """
    T = x_ref.shape[0]
    B = x_ref.shape[1]
    H = whh_ref.shape[0]

    def step(t, carry):
        h, c = carry
        # Fused degenerate (K=1) input projection: x_t * w_ih_row + bias.
        # (B,1) * (1,4H) broadcast fma on the VPU; independent of the recurrent
        # matmul inputs, so it issues while the MXU op is in flight.
        x_t = x_ref[t]                                         # (B, 1)
        xg = x_t * wrow_ref[...] + bias_ref[...]               # (B, 4H)

        # Recurrent matmul on the MXU, f32 accumulation.
        gates = xg + jnp.dot(h.astype(jnp.bfloat16), whh_ref[...],
                             preferred_element_type=jnp.float32)

        # PyTorch gate order: i, f, g, o (o last -> drains from the MRF last).
        i_g = _sigmoid_via_tanh(gates[:, 0 * H:1 * H])
        f_g = _sigmoid_via_tanh(gates[:, 1 * H:2 * H])
        g_g = jnp.tanh(gates[:, 2 * H:3 * H])
        o_g = _sigmoid_via_tanh(gates[:, 3 * H:4 * H])

        c_new = f_g * c + i_g * g_g
        h_new = o_g * jnp.tanh(c_new)
        return h_new, c_new

    h0 = jnp.zeros((B, H), jnp.float32)
    c0 = jnp.zeros((B, H), jnp.float32)
    # Fully unroll short sequences so LLO can schedule across timesteps; partial
    # unroll for long sequences to bound instruction memory / vreg pressure.
    unroll = True if T <= 16 else 8
    h_final, _ = jax.lax.fori_loop(0, T, step, (h0, c0), unroll=unroll)

    # Folded O=1 FC: VPU multiply + lane (XLU) reduction + bias. One masked narrow
    # store of (B, 1) is negligible and saves an extra XLA launch + HBM round trip.
    out_ref[...] = (jnp.sum(h_final * wfc_ref[...], axis=1, keepdims=True)
                    + bfc_ref[...])


def lstm_forward(x, w_ih, w_hh, b_ih, b_hh, w_fc, b_fc):
    """x: (T, B, I) float32, I must be 1. Returns (B, OUTPUT_SIZE) = fc(lstm_out[-1])."""
    T, B, I = x.shape
    H = w_hh.shape[1]
    if T == 0:
        raise ValueError("Empty sequence (T == 0) is not supported.")
    if I != 1:
        raise ValueError("This fused kernel assumes input_size == 1.")

    # Pad batch to a multiple of 8 (f32 sublane requirement); slice output back.
    B_pad = max(8, ((B + 7) // 8) * 8)
    if B_pad != B:
        x = jnp.pad(x, ((0, 0), (0, B_pad - B), (0, 0)))
    x = x.astype(jnp.float32)

    # Parameter repacking (all tiny, one-time):
    w_row = w_ih.reshape(1, 4 * H).astype(jnp.float32)          # w_ih[:, 0] as (1, 4H)
    bias = (b_ih + b_hh).reshape(1, 4 * H).astype(jnp.float32)  # fused biases
    whh_bf16 = jnp.transpose(w_hh).astype(jnp.bfloat16)         # (H, 4H) for the MXU
    wfc_row = w_fc.reshape(1, H).astype(jnp.float32)            # (1, H)
    bfc = b_fc.reshape(1, 1).astype(jnp.float32)                # (1, 1)

    # TODO(synk): for very large T on v7x (64 MiB VMEM), stream x over a T grid axis
    # instead of the single whole-array block.
    out = pl.pallas_call(
        lstm_fused_kernel,
        out_shape=jax.ShapeDtypeStruct((B_pad, OUTPUT_SIZE), jnp.float32),
        grid_spec=pltpu.PrefetchScalarGridSpec(
            num_scalar_prefetch=0,
            grid=(1,),
            in_specs=[
                pl.BlockSpec((T, B_pad, 1), lambda i: (0, 0, 0)),   # x
                pl.BlockSpec((1, 4 * H), lambda i: (0, 0)),         # w_ih row
                pl.BlockSpec((1, 4 * H), lambda i: (0, 0)),         # fused bias
                pl.BlockSpec((H, 4 * H), lambda i: (0, 0)),         # W_hh^T (bf16)
                pl.BlockSpec((1, H), lambda i: (0, 0)),             # fc weight row
                pl.BlockSpec((1, 1), lambda i: (0, 0)),             # fc bias
            ],
            out_specs=pl.BlockSpec((B_pad, OUTPUT_SIZE), lambda i: (0, 0)),
        ),
        compiler_params=pltpu.CompilerParams(
            dimension_semantics=("arbitrary",)),
    )(x, w_row, bias, whh_bf16, wfc_row, bfc)

    return out[:B]


def lstm_reference(x, w_ih, w_hh, b_ih, b_hh, w_fc, b_fc):
    """Pure-JAX f32 reference of the PyTorch module forward."""
    T, B, I = x.shape
    H = w_hh.shape[1]
    h = jnp.zeros((B, H), jnp.float32)
    c = jnp.zeros((B, H), jnp.float32)
    for t in range(T):
        gates = x[t] @ w_ih.T + h @ w_hh.T + b_ih + b_hh
        i_g = jax.nn.sigmoid(gates[:, 0 * H:1 * H])
        f_g = jax.nn.sigmoid(gates[:, 1 * H:2 * H])
        g_g = jnp.tanh(gates[:, 2 * H:3 * H])
        o_g = jax.nn.sigmoid(gates[:, 3 * H:4 * H])
        c = f_g * c + i_g * g_g
        h = o_g * jnp.tanh(c)
    return h @ w_fc.T + b_fc


if __name__ == "__main__":
    T, B = 8, 4                  # B=4 exercises the batch-padding path (pads to 8)
    H, I, O = HIDDEN_SIZE, INPUT_SIZE, OUTPUT_SIZE

    key = jax.random.PRNGKey(0)
    ks = jax.random.split(key, 8)
    bound = 1.0 / jnp.sqrt(H)

    # Deterministic synthetic parameters (PyTorch-style uniform init bounds).
    w_ih = jax.random.uniform(ks[0], (4 * H, I), jnp.float32, -bound, bound)
    w_hh = jax.random.uniform(ks[1], (4 * H, H), jnp.float32, -bound, bound)
    b_ih = jax.random.uniform(ks[2], (4 * H,), jnp.float32, -bound, bound)
    b_hh = jax.random.uniform(ks[3], (4 * H,), jnp.float32, -bound, bound)
    w_fc = jax.random.uniform(ks[4], (O, H), jnp.float32, -bound, bound)
    b_fc = jax.random.uniform(ks[5], (O,), jnp.float32, -bound, bound)

    x = jax.random.normal(ks[6], (T, B, I), jnp.float32)

    out = lstm_forward(x, w_ih, w_hh, b_ih, b_hh, w_fc, b_fc)
    out = jax.block_until_ready(out)

    ref = lstm_reference(x, w_ih, w_hh, b_ih, b_hh, w_fc, b_fc)
    assert out.shape == (B, O)
    # Recurrent matmul runs in bf16 (f32 accumulate) -> allow small numerical drift
    # vs. the full-f32 reference.
    assert jnp.allclose(out, ref, atol=1e-2, rtol=1e-2), (out, ref)

    print("KERNEL_OK")
</pallas_src>

<mosaic_0001>
module attributes {stable_mosaic.version = 11 : i64} {
  func.func @lstm_fused_kernel(%arg0: i32, %arg1: memref<8x8x1xf32, #tpu.memory_space<vmem>>, %arg2: memref<1x512xf32, #tpu.memory_space<vmem>>, %arg3: memref<1x512xf32, #tpu.memory_space<vmem>>, %arg4: memref<128x512xbf16, #tpu.memory_space<vmem>>, %arg5: memref<1x128xf32, #tpu.memory_space<vmem>>, %arg6: memref<1x1xf32, #tpu.memory_space<vmem>>, %arg7: memref<8x1xf32, #tpu.memory_space<vmem>>) attributes {dimension_semantics = [#tpu.dimension_semantics<arbitrary>], iteration_bounds = array<i64: 1>, scalar_prefetch = 0 : i64, scratch_operands = 0 : i64, tpu.core_type = #tpu.core_type<tc>, window_params = [{pipeline_mode = #tpu.pipeline_mode<synchronous>, transform_indices = @transform_0, window_bounds = array<i64: 8, 8, 1>}, {pipeline_mode = #tpu.pipeline_mode<synchronous>, transform_indices = @transform_1, window_bounds = array<i64: 1, 512>}, {pipeline_mode = #tpu.pipeline_mode<synchronous>, transform_indices = @transform_2, window_bounds = array<i64: 1, 512>}, {pipeline_mode = #tpu.pipeline_mode<synchronous>, transform_indices = @transform_3, window_bounds = array<i64: 128, 512>}, {pipeline_mode = #tpu.pipeline_mode<synchronous>, transform_indices = @transform_4, window_bounds = array<i64: 1, 128>}, {pipeline_mode = #tpu.pipeline_mode<synchronous>, transform_indices = @transform_5, window_bounds = array<i64: 1, 1>}, {pipeline_mode = #tpu.pipeline_mode<synchronous>, transform_indices = @transform_6, window_bounds = array<i64: 8, 1>}]} {
    %cst = arith.constant 0.000000e+00 : f32
    %0 = vector.broadcast %cst : f32 to vector<8x128xf32>
    %cst_0 = arith.constant 0.000000e+00 : f32
    %1 = vector.broadcast %cst_0 : f32 to vector<8x128xf32>
    %c0_i32 = arith.constant 0 : i32
    %2 = arith.index_cast %c0_i32 : i32 to index
    %c0 = arith.constant 0 : index
    %c0_1 = arith.constant 0 : index
    %3 = vector.load %arg1[%2, %c0, %c0_1] : memref<8x8x1xf32, #tpu.memory_space<vmem>>, vector<1x8x1xf32>
    %4 = vector.shape_cast %3 : vector<1x8x1xf32> to vector<8x1xf32>
    %c0_2 = arith.constant 0 : index
    %c0_3 = arith.constant 0 : index
    %5 = vector.load %arg2[%c0_2, %c0_3] : memref<1x512xf32, #tpu.memory_space<vmem>>, vector<1x512xf32>
    %6 = vector.broadcast %4 : vector<8x1xf32> to vector<8x512xf32>
    %7 = vector.broadcast %5 : vector<1x512xf32> to vector<8x512xf32>
    %8 = arith.mulf %6, %7 : vector<8x512xf32>
    %c0_4 = arith.constant 0 : index
    %c0_5 = arith.constant 0 : index
    %9 = vector.load %arg3[%c0_4, %c0_5] : memref<1x512xf32, #tpu.memory_space<vmem>>, vector<1x512xf32>
    %10 = vector.broadcast %9 : vector<1x512xf32> to vector<8x512xf32>
    %11 = arith.addf %8, %10 : vector<8x512xf32>
    %12 = arith.truncf %0 : vector<8x128xf32> to vector<8x128xbf16>
    %c0_6 = arith.constant 0 : index
    %c0_7 = arith.constant 0 : index
    %13 = vector.load %arg4[%c0_6, %c0_7] : memref<128x512xbf16, #tpu.memory_space<vmem>>, vector<128x512xbf16>
    %cst_8 = arith.constant dense<0.000000e+00> : vector<8x512xf32>
    %14 = tpu.matmul %12, %13, %cst_8 {dimension_numbers = #tpu.dot_dimension_numbers<[1], [0], [0], [1], [0, 0, 1, 1], [], []>} : vector<8x128xbf16>, vector<128x512xbf16>, vector<8x512xf32> -> vector<8x512xf32>
    %15 = arith.addf %11, %14 : vector<8x512xf32>
    %16 = vector.extract_strided_slice %15 {offsets = [0, 0], sizes = [8, 128], strides = [1, 1]} : vector<8x512xf32> to vector<8x128xf32>
    %cst_9 = arith.constant 5.000000e-01 : f32
    %17 = vector.broadcast %cst_9 : f32 to vector<8x128xf32>
    %18 = arith.mulf %17, %16 : vector<8x128xf32>
    %19 = math.tanh %18 : vector<8x128xf32>
    %cst_10 = arith.constant 1.000000e+00 : f32
    %20 = vector.broadcast %cst_10 : f32 to vector<8x128xf32>
    %21 = arith.addf %19, %20 : vector<8x128xf32>
    %cst_11 = arith.constant 5.000000e-01 : f32
    %22 = vector.broadcast %cst_11 : f32 to vector<8x128xf32>
    %23 = arith.mulf %22, %21 : vector<8x128xf32>
    %24 = vector.extract_strided_slice %15 {offsets = [0, 128], sizes = [8, 128], strides = [1, 1]} : vector<8x512xf32> to vector<8x128xf32>
    %cst_12 = arith.constant 5.000000e-01 : f32
    %25 = vector.broadcast %cst_12 : f32 to vector<8x128xf32>
    %26 = arith.mulf %25, %24 : vector<8x128xf32>
    %27 = math.tanh %26 : vector<8x128xf32>
    %cst_13 = arith.constant 1.000000e+00 : f32
    %28 = vector.broadcast %cst_13 : f32 to vector<8x128xf32>
    %29 = arith.addf %27, %28 : vector<8x128xf32>
    %cst_14 = arith.constant 5.000000e-01 : f32
    %30 = vector.broadcast %cst_14 : f32 to vector<8x128xf32>
    %31 = arith.mulf %30, %29 : vector<8x128xf32>
    %32 = vector.extract_strided_slice %15 {offsets = [0, 256], sizes = [8, 128], strides = [1, 1]} : vector<8x512xf32> to vector<8x128xf32>
    %33 = math.tanh %32 : vector<8x128xf32>
    %34 = vector.extract_strided_slice %15 {offsets = [0, 384], sizes = [8, 128], strides = [1, 1]} : vector<8x512xf32> to vector<8x128xf32>
    %cst_15 = arith.constant 5.000000e-01 : f32
    %35 = vector.broadcast %cst_15 : f32 to vector<8x128xf32>
    %36 = arith.mulf %35, %34 : vector<8x128xf32>
    %37 = math.tanh %36 : vector<8x128xf32>
    %cst_16 = arith.constant 1.000000e+00 : f32
    %38 = vector.broadcast %cst_16 : f32 to vector<8x128xf32>
    %39 = arith.addf %37, %38 : vector<8x128xf32>
    %cst_17 = arith.constant 5.000000e-01 : f32
    %40 = vector.broadcast %cst_17 : f32 to vector<8x128xf32>
    %41 = arith.mulf %40, %39 : vector<8x128xf32>
    %42 = arith.mulf %31, %1 : vector<8x128xf32>
    %43 = arith.mulf %23, %33 : vector<8x128xf32>
    %44 = arith.addf %42, %43 : vector<8x128xf32>
    %45 = math.tanh %44 : vector<8x128xf32>
    %46 = arith.mulf %41, %45 : vector<8x128xf32>
    %c1_i32 = arith.constant 1 : i32
    %47 = arith.index_cast %c1_i32 : i32 to index
    %c0_18 = arith.constant 0 : index
    %c0_19 = arith.constant 0 : index
    %48 = vector.load %arg1[%47, %c0_18, %c0_19] : memref<8x8x1xf32, #tpu.memory_space<vmem>>, vector<1x8x1xf32>
    %49 = vector.shape_cast %48 : vector<1x8x1xf32> to vector<8x1xf32>
    %c0_20 = arith.constant 0 : index
    %c0_21 = arith.constant 0 : index
    %50 = vector.load %arg2[%c0_20, %c0_21] : memref<1x512xf32, #tpu.memory_space<vmem>>, vector<1x512xf32>
    %51 = vector.broadcast %49 : vector<8x1xf32> to vector<8x512xf32>
    %52 = vector.broadcast %50 : vector<1x512xf32> to vector<8x512xf32>
    %53 = arith.mulf %51, %52 : vector<8x512xf32>
    %c0_22 = arith.constant 0 : index
    %c0_23 = arith.constant 0 : index
    %54 = vector.load %arg3[%c0_22, %c0_23] : memref<1x512xf32, #tpu.memory_space<vmem>>, vector<1x512xf32>
    %55 = vector.broadcast %54 : vector<1x512xf32> to vector<8x512xf32>
    %56 = arith.addf %53, %55 : vector<8x512xf32>
    %57 = arith.truncf %46 : vector<8x128xf32> to vector<8x128xbf16>
    %c0_24 = arith.constant 0 : index
    %c0_25 = arith.constant 0 : index
    %58 = vector.load %arg4[%c0_24, %c0_25] : memref<128x512xbf16, #tpu.memory_space<vmem>>, vector<128x512xbf16>
    %cst_26 = arith.constant dense<0.000000e+00> : vector<8x512xf32>
    %59 = tpu.matmul %57, %58, %cst_26 {dimension_numbers = #tpu.dot_dimension_numbers<[1], [0], [0], [1], [0, 0, 1, 1], [], []>} : vector<8x128xbf16>, vector<128x512xbf16>, vector<8x512xf32> -> vector<8x512xf32>
    %60 = arith.addf %56, %59 : vector<8x512xf32>
    %61 = vector.extract_strided_slice %60 {offsets = [0, 0], sizes = [8, 128], strides = [1, 1]} : vector<8x512xf32> to vector<8x128xf32>
    %cst_27 = arith.constant 5.000000e-01 : f32
    %62 = vector.broadcast %cst_27 : f32 to vector<8x128xf32>
    %63 = arith.mulf %62, %61 : vector<8x128xf32>
    %64 = math.tanh %63 : vector<8x128xf32>
    %cst_28 = arith.constant 1.000000e+00 : f32
    %65 = vector.broadcast %cst_28 : f32 to vector<8x128xf32>
    %66 = arith.addf %64, %65 : vector<8x128xf32>
    %cst_29 = arith.constant 5.000000e-01 : f32
    %67 = vector.broadcast %cst_29 : f32 to vector<8x128xf32>
    %68 = arith.mulf %67, %66 : vector<8x128xf32>
    %69 = vector.extract_strided_slice %60 {offsets = [0, 128], sizes = [8, 128], strides = [1, 1]} : vector<8x512xf32> to vector<8x128xf32>
    %cst_30 = arith.constant 5.000000e-01 : f32
    %70 = vector.broadcast %cst_30 : f32 to vector<8x128xf32>
    %71 = arith.mulf %70, %69 : vector<8x128xf32>
    %72 = math.tanh %71 : vector<8x128xf32>
    %cst_31 = arith.constant 1.000000e+00 : f32
    %73 = vector.broadcast %cst_31 : f32 to vector<8x128xf32>
    %74 = arith.addf %72, %73 : vector<8x128xf32>
    %cst_32 = arith.constant 5.000000e-01 : f32
    %75 = vector.broadcast %cst_32 : f32 to vector<8x128xf32>
    %76 = arith.mulf %75, %74 : vector<8x128xf32>
    %77 = vector.extract_strided_slice %60 {offsets = [0, 256], sizes = [8, 128], strides = [1, 1]} : vector<8x512xf32> to vector<8x128xf32>
    %78 = math.tanh %77 : vector<8x128xf32>
    %79 = vector.extract_strided_slice %60 {offsets = [0, 384], sizes = [8, 128], strides = [1, 1]} : vector<8x512xf32> to vector<8x128xf32>
    %cst_33 = arith.constant 5.000000e-01 : f32
    %80 = vector.broadcast %cst_33 : f32 to vector<8x128xf32>
    %81 = arith.mulf %80, %79 : vector<8x128xf32>
    %82 = math.tanh %81 : vector<8x128xf32>
    %cst_34 = arith.constant 1.000000e+00 : f32
    %83 = vector.broadcast %cst_34 : f32 to vector<8x128xf32>
    %84 = arith.addf %82, %83 : vector<8x128xf32>
    %cst_35 = arith.constant 5.000000e-01 : f32
    %85 = vector.broadcast %cst_35 : f32 to vector<8x128xf32>
    %86 = arith.mulf %85, %84 : vector<8x128xf32>
    %87 = arith.mulf %76, %44 : vector<8x128xf32>
    %88 = arith.mulf %68, %78 : vector<8x128xf32>
    %89 = arith.addf %87, %88 : vector<8x128xf32>
    %90 = math.tanh %89 : vector<8x128xf32>
    %91 = arith.mulf %86, %90 : vector<8x128xf32>
    %c2_i32 = arith.constant 2 : i32
    %92 = arith.index_cast %c2_i32 : i32 to index
    %c0_36 = arith.constant 0 : index
    %c0_37 = arith.constant 0 : index
    %93 = vector.load %arg1[%92, %c0_36, %c0_37] : memref<8x8x1xf32, #tpu.memory_space<vmem>>, vector<1x8x1xf32>
    %94 = vector.shape_cast %93 : vector<1x8x1xf32> to vector<8x1xf32>
    %c0_38 = arith.constant 0 : index
    %c0_39 = arith.constant 0 : index
    %95 = vector.load %arg2[%c0_38, %c0_39] : memref<1x512xf32, #tpu.memory_space<vmem>>, vector<1x512xf32>
    %96 = vector.broadcast %94 : vector<8x1xf32> to vector<8x512xf32>
    %97 = vector.broadcast %95 : vector<1x512xf32> to vector<8x512xf32>
    %98 = arith.mulf %96, %97 : vector<8x512xf32>
    %c0_40 = arith.constant 0 : index
    %c0_41 = arith.constant 0 : index
    %99 = vector.load %arg3[%c0_40, %c0_41] : memref<1x512xf32, #tpu.memory_space<vmem>>, vector<1x512xf32>
    %100 = vector.broadcast %99 : vector<1x512xf32> to vector<8x512xf32>
    %101 = arith.addf %98, %100 : vector<8x512xf32>
    %102 = arith.truncf %91 : vector<8x128xf32> to vector<8x128xbf16>
    %c0_42 = arith.constant 0 : index
    %c0_43 = arith.constant 0 : index
    %103 = vector.load %arg4[%c0_42, %c0_43] : memref<128x512xbf16, #tpu.memory_space<vmem>>, vector<128x512xbf16>
    %cst_44 = arith.constant dense<0.000000e+00> : vector<8x512xf32>
    %104 = tpu.matmul %102, %103, %cst_44 {dimension_numbers = #tpu.dot_dimension_numbers<[1], [0], [0], [1], [0, 0, 1, 1], [], []>} : vector<8x128xbf16>, vector<128x512xbf16>, vector<8x512xf32> -> vector<8x512xf32>
    %105 = arith.addf %101, %104 : vector<8x512xf32>
    %106 = vector.extract_strided_slice %105 {offsets = [0, 0], sizes = [8, 128], strides = [1, 1]} : vector<8x512xf32> to vector<8x128xf32>
    %cst_45 = arith.constant 5.000000e-01 : f32
    %107 = vector.broadcast %cst_45 : f32 to vector<8x128xf32>
    %108 = arith.mulf %107, %106 : vector<8x128xf32>
    %109 = math.tanh %108 : vector<8x128xf32>
    %cst_46 = arith.constant 1.000000e+00 : f32
    %110 = vector.broadcast %cst_46 : f32 to vector<8x128xf32>
    %111 = arith.addf %109, %110 : vector<8x128xf32>
    %cst_47 = arith.constant 5.000000e-01 : f32
    %112 = vector.broadcast %cst_47 : f32 to vector<8x128xf32>
    %113 = arith.mulf %112, %111 : vector<8x128xf32>
    %114 = vector.extract_strided_slice %105 {offsets = [0, 128], sizes = [8, 128], strides = [1, 1]} : vector<8x512xf32> to vector<8x128xf32>
    %cst_48 = arith.constant 5.000000e-01 : f32
    %115 = vector.broadcast %cst_48 : f32 to vector<8x128xf32>
    %116 = arith.mulf %115, %114 : vector<8x128xf32>
    %117 = math.tanh %116 : vector<8x128xf32>
    %cst_49 = arith.constant 1.000000e+00 : f32
    %118 = vector.broadcast %cst_49 : f32 to vector<8x128xf32>
    %119 = arith.addf %117, %118 : vector<8x128xf32>
    %cst_50 = arith.constant 5.000000e-01 : f32
    %120 = vector.broadcast %cst_50 : f32 to vector<8x128xf32>
    %121 = arith.mulf %120, %119 : vector<8x128xf32>
    %122 = vector.extract_strided_slice %105 {offsets = [0, 256], sizes = [8, 128], strides = [1, 1]} : vector<8x512xf32> to vector<8x128xf32>
    %123 = math.tanh %122 : vector<8x128xf32>
    %124 = vector.extract_strided_slice %105 {offsets = [0, 384], sizes = [8, 128], strides = [1, 1]} : vector<8x512xf32> to vector<8x128xf32>
    %cst_51 = arith.constant 5.000000e-01 : f32
    %125 = vector.broadcast %cst_51 : f32 to vector<8x128xf32>
    %126 = arith.mulf %125, %124 : vector<8x128xf32>
    %127 = math.tanh %126 : vector<8x128xf32>
    %cst_52 = arith.constant 1.000000e+00 : f32
    %128 = vector.broadcast %cst_52 : f32 to vector<8x128xf32>
    %129 = arith.addf %127, %128 : vector<8x128xf32>
    %cst_53 = arith.constant 5.000000e-01 : f32
    %130 = vector.broadcast %cst_53 : f32 to vector<8x128xf32>
    %131 = arith.mulf %130, %129 : vector<8x128xf32>
    %132 = arith.mulf %121, %89 : vector<8x128xf32>
    %133 = arith.mulf %113, %123 : vector<8x128xf32>
    %134 = arith.addf %132, %133 : vector<8x128xf32>
    %135 = math.tanh %134 : vector<8x128xf32>
    %136 = arith.mulf %131, %135 : vector<8x128xf32>
    %c3_i32 = arith.constant 3 : i32
    %137 = arith.index_cast %c3_i32 : i32 to index
    %c0_54 = arith.constant 0 : index
    %c0_55 = arith.constant 0 : index
    %138 = vector.load %arg1[%137, %c0_54, %c0_55] : memref<8x8x1xf32, #tpu.memory_space<vmem>>, vector<1x8x1xf32>
    %139 = vector.shape_cast %138 : vector<1x8x1xf32> to vector<8x1xf32>
    %c0_56 = arith.constant 0 : index
    %c0_57 = arith.constant 0 : index
    %140 = vector.load %arg2[%c0_56, %c0_57] : memref<1x512xf32, #tpu.memory_space<vmem>>, vector<1x512xf32>
    %141 = vector.broadcast %139 : vector<8x1xf32> to vector<8x512xf32>
    %142 = vector.broadcast %140 : vector<1x512xf32> to vector<8x512xf32>
    %143 = arith.mulf %141, %142 : vector<8x512xf32>
    %c0_58 = arith.constant 0 : index
    %c0_59 = arith.constant 0 : index
    %144 = vector.load %arg3[%c0_58, %c0_59] : memref<1x512xf32, #tpu.memory_space<vmem>>, vector<1x512xf32>
    %145 = vector.broadcast %144 : vector<1x512xf32> to vector<8x512xf32>
    %146 = arith.addf %143, %145 : vector<8x512xf32>
    %147 = arith.truncf %136 : vector<8x128xf32> to vector<8x128xbf16>
    %c0_60 = arith.constant 0 : index
    %c0_61 = arith.constant 0 : index
    %148 = vector.load %arg4[%c0_60, %c0_61] : memref<128x512xbf16, #tpu.memory_space<vmem>>, vector<128x512xbf16>
    %cst_62 = arith.constant dense<0.000000e+00> : vector<8x512xf32>
    %149 = tpu.matmul %147, %148, %cst_62 {dimension_numbers = #tpu.dot_dimension_numbers<[1], [0], [0], [1], [0, 0, 1, 1], [], []>} : vector<8x128xbf16>, vector<128x512xbf16>, vector<8x512xf32> -> vector<8x512xf32>
    %150 = arith.addf %146, %149 : vector<8x512xf32>
    %151 = vector.extract_strided_slice %150 {offsets = [0, 0], sizes = [8, 128], strides = [1, 1]} : vector<8x512xf32> to vector<8x128xf32>
    %cst_63 = arith.constant 5.000000e-01 : f32
    %152 = vector.broadcast %cst_63 : f32 to vector<8x128xf32>
    %153 = arith.mulf %152, %151 : vector<8x128xf32>
    %154 = math.tanh %153 : vector<8x128xf32>
    %cst_64 = arith.constant 1.000000e+00 : f32
    %155 = vector.broadcast %cst_64 : f32 to vector<8x128xf32>
    %156 = arith.addf %154, %155 : vector<8x128xf32>
    %cst_65 = arith.constant 5.000000e-01 : f32
    %157 = vector.broadcast %cst_65 : f32 to vector<8x128xf32>
    %158 = arith.mulf %157, %156 : vector<8x128xf32>
    %159 = vector.extract_strided_slice %150 {offsets = [0, 128], sizes = [8, 128], strides = [1, 1]} : vector<8x512xf32> to vector<8x128xf32>
    %cst_66 = arith.constant 5.000000e-01 : f32
    %160 = vector.broadcast %cst_66 : f32 to vector<8x128xf32>
    %161 = arith.mulf %160, %159 : vector<8x128xf32>
    %162 = math.tanh %161 : vector<8x128xf32>
    %cst_67 = arith.constant 1.000000e+00 : f32
    %163 = vector.broadcast %cst_67 : f32 to vector<8x128xf32>
    %164 = arith.addf %162, %163 : vector<8x128xf32>
    %cst_68 = arith.constant 5.000000e-01 : f32
    %165 = vector.broadcast %cst_68 : f32 to vector<8x128xf32>
    %166 = arith.mulf %165, %164 : vector<8x128xf32>
    %167 = vector.extract_strided_slice %150 {offsets = [0, 256], sizes = [8, 128], strides = [1, 1]} : vector<8x512xf32> to vector<8x128xf32>
    %168 = math.tanh %167 : vector<8x128xf32>
    %169 = vector.extract_strided_slice %150 {offsets = [0, 384], sizes = [8, 128], strides = [1, 1]} : vector<8x512xf32> to vector<8x128xf32>
    %cst_69 = arith.constant 5.000000e-01 : f32
    %170 = vector.broadcast %cst_69 : f32 to vector<8x128xf32>
    %171 = arith.mulf %170, %169 : vector<8x128xf32>
    %172 = math.tanh %171 : vector<8x128xf32>
    %cst_70 = arith.constant 1.000000e+00 : f32
    %173 = vector.broadcast %cst_70 : f32 to vector<8x128xf32>
    %174 = arith.addf %172, %173 : vector<8x128xf32>
    %cst_71 = arith.constant 5.000000e-01 : f32
    %175 = vector.broadcast %cst_71 : f32 to vector<8x128xf32>
    %176 = arith.mulf %175, %174 : vector<8x128xf32>
    %177 = arith.mulf %166, %134 : vector<8x128xf32>
    %178 = arith.mulf %158, %168 : vector<8x128xf32>
    %179 = arith.addf %177, %178 : vector<8x128xf32>
    %180 = math.tanh %179 : vector<8x128xf32>
    %181 = arith.mulf %176, %180 : vector<8x128xf32>
    %c4_i32 = arith.constant 4 : i32
    %182 = arith.index_cast %c4_i32 : i32 to index
    %c0_72 = arith.constant 0 : index
    %c0_73 = arith.constant 0 : index
    %183 = vector.load %arg1[%182, %c0_72, %c0_73] : memref<8x8x1xf32, #tpu.memory_space<vmem>>, vector<1x8x1xf32>
    %184 = vector.shape_cast %183 : vector<1x8x1xf32> to vector<8x1xf32>
    %c0_74 = arith.constant 0 : index
    %c0_75 = arith.constant 0 : index
    %185 = vector.load %arg2[%c0_74, %c0_75] : memref<1x512xf32, #tpu.memory_space<vmem>>, vector<1x512xf32>
    %186 = vector.broadcast %184 : vector<8x1xf32> to vector<8x512xf32>
    %187 = vector.broadcast %185 : vector<1x512xf32> to vector<8x512xf32>
    %188 = arith.mulf %186, %187 : vector<8x512xf32>
    %c0_76 = arith.constant 0 : index
    %c0_77 = arith.constant 0 : index
    %189 = vector.load %arg3[%c0_76, %c0_77] : memref<1x512xf32, #tpu.memory_space<vmem>>, vector<1x512xf32>
    %190 = vector.broadcast %189 : vector<1x512xf32> to vector<8x512xf32>
    %191 = arith.addf %188, %190 : vector<8x512xf32>
    %192 = arith.truncf %181 : vector<8x128xf32> to vector<8x128xbf16>
    %c0_78 = arith.constant 0 : index
    %c0_79 = arith.constant 0 : index
    %193 = vector.load %arg4[%c0_78, %c0_79] : memref<128x512xbf16, #tpu.memory_space<vmem>>, vector<128x512xbf16>
    %cst_80 = arith.constant dense<0.000000e+00> : vector<8x512xf32>
    %194 = tpu.matmul %192, %193, %cst_80 {dimension_numbers = #tpu.dot_dimension_numbers<[1], [0], [0], [1], [0, 0, 1, 1], [], []>} : vector<8x128xbf16>, vector<128x512xbf16>, vector<8x512xf32> -> vector<8x512xf32>
    %195 = arith.addf %191, %194 : vector<8x512xf32>
    %196 = vector.extract_strided_slice %195 {offsets = [0, 0], sizes = [8, 128], strides = [1, 1]} : vector<8x512xf32> to vector<8x128xf32>
    %cst_81 = arith.constant 5.000000e-01 : f32
    %197 = vector.broadcast %cst_81 : f32 to vector<8x128xf32>
    %198 = arith.mulf %197, %196 : vector<8x128xf32>
    %199 = math.tanh %198 : vector<8x128xf32>
    %cst_82 = arith.constant 1.000000e+00 : f32
    %200 = vector.broadcast %cst_82 : f32 to vector<8x128xf32>
    %201 = arith.addf %199, %200 : vector<8x128xf32>
    %cst_83 = arith.constant 5.000000e-01 : f32
    %202 = vector.broadcast %cst_83 : f32 to vector<8x128xf32>
    %203 = arith.mulf %202, %201 : vector<8x128xf32>
    %204 = vector.extract_strided_slice %195 {offsets = [0, 128], sizes = [8, 128], strides = [1, 1]} : vector<8x512xf32> to vector<8x128xf32>
    %cst_84 = arith.constant 5.000000e-01 : f32
    %205 = vector.broadcast %cst_84 : f32 to vector<8x128xf32>
    %206 = arith.mulf %205, %204 : vector<8x128xf32>
    %207 = math.tanh %206 : vector<8x128xf32>
    %cst_85 = arith.constant 1.000000e+00 : f32
    %208 = vector.broadcast %cst_85 : f32 to vector<8x128xf32>
    %209 = arith.addf %207, %208 : vector<8x128xf32>
    %cst_86 = arith.constant 5.000000e-01 : f32
    %210 = vector.broadcast %cst_86 : f32 to vector<8x128xf32>
    %211 = arith.mulf %210, %209 : vector<8x128xf32>
    %212 = vector.extract_strided_slice %195 {offsets = [0, 256], sizes = [8, 128], strides = [1, 1]} : vector<8x512xf32> to vector<8x128xf32>
    %213 = math.tanh %212 : vector<8x128xf32>
    %214 = vector.extract_strided_slice %195 {offsets = [0, 384], sizes = [8, 128], strides = [1, 1]} : vector<8x512xf32> to vector<8x128xf32>
    %cst_87 = arith.constant 5.000000e-01 : f32
    %215 = vector.broadcast %cst_87 : f32 to vector<8x128xf32>
    %216 = arith.mulf %215, %214 : vector<8x128xf32>
    %217 = math.tanh %216 : vector<8x128xf32>
    %cst_88 = arith.constant 1.000000e+00 : f32
    %218 = vector.broadcast %cst_88 : f32 to vector<8x128xf32>
    %219 = arith.addf %217, %218 : vector<8x128xf32>
    %cst_89 = arith.constant 5.000000e-01 : f32
    %220 = vector.broadcast %cst_89 : f32 to vector<8x128xf32>
    %221 = arith.mulf %220, %219 : vector<8x128xf32>
    %222 = arith.mulf %211, %179 : vector<8x128xf32>
    %223 = arith.mulf %203, %213 : vector<8x128xf32>
    %224 = arith.addf %222, %223 : vector<8x128xf32>
    %225 = math.tanh %224 : vector<8x128xf32>
    %226 = arith.mulf %221, %225 : vector<8x128xf32>
    %c5_i32 = arith.constant 5 : i32
    %227 = arith.index_cast %c5_i32 : i32 to index
    %c0_90 = arith.constant 0 : index
    %c0_91 = arith.constant 0 : index
    %228 = vector.load %arg1[%227, %c0_90, %c0_91] : memref<8x8x1xf32, #tpu.memory_space<vmem>>, vector<1x8x1xf32>
    %229 = vector.shape_cast %228 : vector<1x8x1xf32> to vector<8x1xf32>
    %c0_92 = arith.constant 0 : index
    %c0_93 = arith.constant 0 : index
    %230 = vector.load %arg2[%c0_92, %c0_93] : memref<1x512xf32, #tpu.memory_space<vmem>>, vector<1x512xf32>
    %231 = vector.broadcast %229 : vector<8x1xf32> to vector<8x512xf32>
    %232 = vector.broadcast %230 : vector<1x512xf32> to vector<8x512xf32>
    %233 = arith.mulf %231, %232 : vector<8x512xf32>
    %c0_94 = arith.constant 0 : index
    %c0_95 = arith.constant 0 : index
    %234 = vector.load %arg3[%c0_94, %c0_95] : memref<1x512xf32, #tpu.memory_space<vmem>>, vector<1x512xf32>
    %235 = vector.broadcast %234 : vector<1x512xf32> to vector<8x512xf32>
    %236 = arith.addf %233, %235 : vector<8x512xf32>
    %237 = arith.truncf %226 : vector<8x128xf32> to vector<8x128xbf16>
    %c0_96 = arith.constant 0 : index
    %c0_97 = arith.constant 0 : index
    %238 = vector.load %arg4[%c0_96, %c0_97] : memref<128x512xbf16, #tpu.memory_space<vmem>>, vector<128x512xbf16>
    %cst_98 = arith.constant dense<0.000000e+00> : vector<8x512xf32>
    %239 = tpu.matmul %237, %238, %cst_98 {dimension_numbers = #tpu.dot_dimension_numbers<[1], [0], [0], [1], [0, 0, 1, 1], [], []>} : vector<8x128xbf16>, vector<128x512xbf16>, vector<8x512xf32> -> vector<8x512xf32>
    %240 = arith.addf %236, %239 : vector<8x512xf32>
    %241 = vector.extract_strided_slice %240 {offsets = [0, 0], sizes = [8, 128], strides = [1, 1]} : vector<8x512xf32> to vector<8x128xf32>
    %cst_99 = arith.constant 5.000000e-01 : f32
    %242 = vector.broadcast %cst_99 : f32 to vector<8x128xf32>
    %243 = arith.mulf %242, %241 : vector<8x128xf32>
    %244 = math.tanh %243 : vector<8x128xf32>
    %cst_100 = arith.constant 1.000000e+00 : f32
    %245 = vector.broadcast %cst_100 : f32 to vector<8x128xf32>
    %246 = arith.addf %244, %245 : vector<8x128xf32>
    %cst_101 = arith.constant 5.000000e-01 : f32
    %247 = vector.broadcast %cst_101 : f32 to vector<8x128xf32>
    %248 = arith.mulf %247, %246 : vector<8x128xf32>
    %249 = vector.extract_strided_slice %240 {offsets = [0, 128], sizes = [8, 128], strides = [1, 1]} : vector<8x512xf32> to vector<8x128xf32>
    %cst_102 = arith.constant 5.000000e-01 : f32
    %250 = vector.broadcast %cst_102 : f32 to vector<8x128xf32>
    %251 = arith.mulf %250, %249 : vector<8x128xf32>
    %252 = math.tanh %251 : vector<8x128xf32>
    %cst_103 = arith.constant 1.000000e+00 : f32
    %253 = vector.broadcast %cst_103 : f32 to vector<8x128xf32>
    %254 = arith.addf %252, %253 : vector<8x128xf32>
    %cst_104 = arith.constant 5.000000e-01 : f32
    %255 = vector.broadcast %cst_104 : f32 to vector<8x128xf32>
    %256 = arith.mulf %255, %254 : vector<8x128xf32>
    %257 = vector.extract_strided_slice %240 {offsets = [0, 256], sizes = [8, 128], strides = [1, 1]} : vector<8x512xf32> to vector<8x128xf32>
    %258 = math.tanh %257 : vector<8x128xf32>
    %259 = vector.extract_strided_slice %240 {offsets = [0, 384], sizes = [8, 128], strides = [1, 1]} : vector<8x512xf32> to vector<8x128xf32>
    %cst_105 = arith.constant 5.000000e-01 : f32
    %260 = vector.broadcast %cst_105 : f32 to vector<8x128xf32>
    %261 = arith.mulf %260, %259 : vector<8x128xf32>
    %262 = math.tanh %261 : vector<8x128xf32>
    %cst_106 = arith.constant 1.000000e+00 : f32
    %263 = vector.broadcast %cst_106 : f32 to vector<8x128xf32>
    %264 = arith.addf %262, %263 : vector<8x128xf32>
    %cst_107 = arith.constant 5.000000e-01 : f32
    %265 = vector.broadcast %cst_107 : f32 to vector<8x128xf32>
    %266 = arith.mulf %265, %264 : vector<8x128xf32>
    %267 = arith.mulf %256, %224 : vector<8x128xf32>
    %268 = arith.mulf %248, %258 : vector<8x128xf32>
    %269 = arith.addf %267, %268 : vector<8x128xf32>
    %270 = math.tanh %269 : vector<8x128xf32>
    %271 = arith.mulf %266, %270 : vector<8x128xf32>
    %c6_i32 = arith.constant 6 : i32
    %272 = arith.index_cast %c6_i32 : i32 to index
    %c0_108 = arith.constant 0 : index
    %c0_109 = arith.constant 0 : index
    %273 = vector.load %arg1[%272, %c0_108, %c0_109] : memref<8x8x1xf32, #tpu.memory_space<vmem>>, vector<1x8x1xf32>
    %274 = vector.shape_cast %273 : vector<1x8x1xf32> to vector<8x1xf32>
    %c0_110 = arith.constant 0 : index
    %c0_111 = arith.constant 0 : index
    %275 = vector.load %arg2[%c0_110, %c0_111] : memref<1x512xf32, #tpu.memory_space<vmem>>, vector<1x512xf32>
    %276 = vector.broadcast %274 : vector<8x1xf32> to vector<8x512xf32>
    %277 = vector.broadcast %275 : vector<1x512xf32> to vector<8x512xf32>
    %278 = arith.mulf %276, %277 : vector<8x512xf32>
    %c0_112 = arith.constant 0 : index
    %c0_113 = arith.constant 0 : index
    %279 = vector.load %arg3[%c0_112, %c0_113] : memref<1x512xf32, #tpu.memory_space<vmem>>, vector<1x512xf32>
    %280 = vector.broadcast %279 : vector<1x512xf32> to vector<8x512xf32>
    %281 = arith.addf %278, %280 : vector<8x512xf32>
    %282 = arith.truncf %271 : vector<8x128xf32> to vector<8x128xbf16>
    %c0_114 = arith.constant 0 : index
    %c0_115 = arith.constant 0 : index
    %283 = vector.load %arg4[%c0_114, %c0_115] : memref<128x512xbf16, #tpu.memory_space<vmem>>, vector<128x512xbf16>
    %cst_116 = arith.constant dense<0.000000e+00> : vector<8x512xf32>
    %284 = tpu.matmul %282, %283, %cst_116 {dimension_numbers = #tpu.dot_dimension_numbers<[1], [0], [0], [1], [0, 0, 1, 1], [], []>} : vector<8x128xbf16>, vector<128x512xbf16>, vector<8x512xf32> -> vector<8x512xf32>
    %285 = arith.addf %281, %284 : vector<8x512xf32>
    %286 = vector.extract_strided_slice %285 {offsets = [0, 0], sizes = [8, 128], strides = [1, 1]} : vector<8x512xf32> to vector<8x128xf32>
    %cst_117 = arith.constant 5.000000e-01 : f32
    %287 = vector.broadcast %cst_117 : f32 to vector<8x128xf32>
    %288 = arith.mulf %287, %286 : vector<8x128xf32>
    %289 = math.tanh %288 : vector<8x128xf32>
    %cst_118 = arith.constant 1.000000e+00 : f32
    %290 = vector.broadcast %cst_118 : f32 to vector<8x128xf32>
    %291 = arith.addf %289, %290 : vector<8x128xf32>
    %cst_119 = arith.constant 5.000000e-01 : f32
    %292 = vector.broadcast %cst_119 : f32 to vector<8x128xf32>
    %293 = arith.mulf %292, %291 : vector<8x128xf32>
    %294 = vector.extract_strided_slice %285 {offsets = [0, 128], sizes = [8, 128], strides = [1, 1]} : vector<8x512xf32> to vector<8x128xf32>
    %cst_120 = arith.constant 5.000000e-01 : f32
    %295 = vector.broadcast %cst_120 : f32 to vector<8x128xf32>
    %296 = arith.mulf %295, %294 : vector<8x128xf32>
    %297 = math.tanh %296 : vector<8x128xf32>
    %cst_121 = arith.constant 1.000000e+00 : f32
    %298 = vector.broadcast %cst_121 : f32 to vector<8x128xf32>
    %299 = arith.addf %297, %298 : vector<8x128xf32>
    %cst_122 = arith.constant 5.000000e-01 : f32
    %300 = vector.broadcast %cst_122 : f32 to vector<8x128xf32>
    %301 = arith.mulf %300, %299 : vector<8x128xf32>
    %302 = vector.extract_strided_slice %285 {offsets = [0, 256], sizes = [8, 128], strides = [1, 1]} : vector<8x512xf32> to vector<8x128xf32>
    %303 = math.tanh %302 : vector<8x128xf32>
    %304 = vector.extract_strided_slice %285 {offsets = [0, 384], sizes = [8, 128], strides = [1, 1]} : vector<8x512xf32> to vector<8x128xf32>
    %cst_123 = arith.constant 5.000000e-01 : f32
    %305 = vector.broadcast %cst_123 : f32 to vector<8x128xf32>
    %306 = arith.mulf %305, %304 : vector<8x128xf32>
    %307 = math.tanh %306 : vector<8x128xf32>
    %cst_124 = arith.constant 1.000000e+00 : f32
    %308 = vector.broadcast %cst_124 : f32 to vector<8x128xf32>
    %309 = arith.addf %307, %308 : vector<8x128xf32>
    %cst_125 = arith.constant 5.000000e-01 : f32
    %310 = vector.broadcast %cst_125 : f32 to vector<8x128xf32>
    %311 = arith.mulf %310, %309 : vector<8x128xf32>
    %312 = arith.mulf %301, %269 : vector<8x128xf32>
    %313 = arith.mulf %293, %303 : vector<8x128xf32>
    %314 = arith.addf %312, %313 : vector<8x128xf32>
    %315 = math.tanh %314 : vector<8x128xf32>
    %316 = arith.mulf %311, %315 : vector<8x128xf32>
    %c7_i32 = arith.constant 7 : i32
    %317 = arith.index_cast %c7_i32 : i32 to index
    %c0_126 = arith.constant 0 : index
    %c0_127 = arith.constant 0 : index
    %318 = vector.load %arg1[%317, %c0_126, %c0_127] : memref<8x8x1xf32, #tpu.memory_space<vmem>>, vector<1x8x1xf32>
    %319 = vector.shape_cast %318 : vector<1x8x1xf32> to vector<8x1xf32>
    %c0_128 = arith.constant 0 : index
    %c0_129 = arith.constant 0 : index
    %320 = vector.load %arg2[%c0_128, %c0_129] : memref<1x512xf32, #tpu.memory_space<vmem>>, vector<1x512xf32>
    %321 = vector.broadcast %319 : vector<8x1xf32> to vector<8x512xf32>
    %322 = vector.broadcast %320 : vector<1x512xf32> to vector<8x512xf32>
    %323 = arith.mulf %321, %322 : vector<8x512xf32>
    %c0_130 = arith.constant 0 : index
    %c0_131 = arith.constant 0 : index
    %324 = vector.load %arg3[%c0_130, %c0_131] : memref<1x512xf32, #tpu.memory_space<vmem>>, vector<1x512xf32>
    %325 = vector.broadcast %324 : vector<1x512xf32> to vector<8x512xf32>
    %326 = arith.addf %323, %325 : vector<8x512xf32>
    %327 = arith.truncf %316 : vector<8x128xf32> to vector<8x128xbf16>
    %c0_132 = arith.constant 0 : index
    %c0_133 = arith.constant 0 : index
    %328 = vector.load %arg4[%c0_132, %c0_133] : memref<128x512xbf16, #tpu.memory_space<vmem>>, vector<128x512xbf16>
    %cst_134 = arith.constant dense<0.000000e+00> : vector<8x512xf32>
    %329 = tpu.matmul %327, %328, %cst_134 {dimension_numbers = #tpu.dot_dimension_numbers<[1], [0], [0], [1], [0, 0, 1, 1], [], []>} : vector<8x128xbf16>, vector<128x512xbf16>, vector<8x512xf32> -> vector<8x512xf32>
    %330 = arith.addf %326, %329 : vector<8x512xf32>
    %331 = vector.extract_strided_slice %330 {offsets = [0, 0], sizes = [8, 128], strides = [1, 1]} : vector<8x512xf32> to vector<8x128xf32>
    %cst_135 = arith.constant 5.000000e-01 : f32
    %332 = vector.broadcast %cst_135 : f32 to vector<8x128xf32>
    %333 = arith.mulf %332, %331 : vector<8x128xf32>
    %334 = math.tanh %333 : vector<8x128xf32>
    %cst_136 = arith.constant 1.000000e+00 : f32
    %335 = vector.broadcast %cst_136 : f32 to vector<8x128xf32>
    %336 = arith.addf %334, %335 : vector<8x128xf32>
    %cst_137 = arith.constant 5.000000e-01 : f32
    %337 = vector.broadcast %cst_137 : f32 to vector<8x128xf32>
    %338 = arith.mulf %337, %336 : vector<8x128xf32>
    %339 = vector.extract_strided_slice %330 {offsets = [0, 128], sizes = [8, 128], strides = [1, 1]} : vector<8x512xf32> to vector<8x128xf32>
    %cst_138 = arith.constant 5.000000e-01 : f32
    %340 = vector.broadcast %cst_138 : f32 to vector<8x128xf32>
    %341 = arith.mulf %340, %339 : vector<8x128xf32>
    %342 = math.tanh %341 : vector<8x128xf32>
    %cst_139 = arith.constant 1.000000e+00 : f32
    %343 = vector.broadcast %cst_139 : f32 to vector<8x128xf32>
    %344 = arith.addf %342, %343 : vector<8x128xf32>
    %cst_140 = arith.constant 5.000000e-01 : f32
    %345 = vector.broadcast %cst_140 : f32 to vector<8x128xf32>
    %346 = arith.mulf %345, %344 : vector<8x128xf32>
    %347 = vector.extract_strided_slice %330 {offsets = [0, 256], sizes = [8, 128], strides = [1, 1]} : vector<8x512xf32> to vector<8x128xf32>
    %348 = math.tanh %347 : vector<8x128xf32>
    %349 = vector.extract_strided_slice %330 {offsets = [0, 384], sizes = [8, 128], strides = [1, 1]} : vector<8x512xf32> to vector<8x128xf32>
    %cst_141 = arith.constant 5.000000e-01 : f32
    %350 = vector.broadcast %cst_141 : f32 to vector<8x128xf32>
    %351 = arith.mulf %350, %349 : vector<8x128xf32>
    %352 = math.tanh %351 : vector<8x128xf32>
    %cst_142 = arith.constant 1.000000e+00 : f32
    %353 = vector.broadcast %cst_142 : f32 to vector<8x128xf32>
    %354 = arith.addf %352, %353 : vector<8x128xf32>
    %cst_143 = arith.constant 5.000000e-01 : f32
    %355 = vector.broadcast %cst_143 : f32 to vector<8x128xf32>
    %356 = arith.mulf %355, %354 : vector<8x128xf32>
    %357 = arith.mulf %346, %314 : vector<8x128xf32>
    %358 = arith.mulf %338, %348 : vector<8x128xf32>
    %359 = arith.addf %357, %358 : vector<8x128xf32>
    %360 = math.tanh %359 : vector<8x128xf32>
    %361 = arith.mulf %356, %360 : vector<8x128xf32>
    %c8_i32 = arith.constant 8 : i32
    %c0_144 = arith.constant 0 : index
    %c0_145 = arith.constant 0 : index
    %362 = vector.load %arg5[%c0_144, %c0_145] : memref<1x128xf32, #tpu.memory_space<vmem>>, vector<1x128xf32>
    %363 = vector.broadcast %362 : vector<1x128xf32> to vector<8x128xf32>
    %364 = arith.mulf %361, %363 : vector<8x128xf32>
    %cst_146 = arith.constant dense<0.000000e+00> : vector<8xf32>
    %365 = vector.multi_reduction <add>, %364, %cst_146 [1] : vector<8x128xf32> to vector<8xf32>
    %366 = vector.shape_cast %365 : vector<8xf32> to vector<8x1xf32>
    %c0_147 = arith.constant 0 : index
    %c0_148 = arith.constant 0 : index
    %367 = vector.load %arg6[%c0_147, %c0_148] : memref<1x1xf32, #tpu.memory_space<vmem>>, vector<1x1xf32>
    %368 = vector.broadcast %367 : vector<1x1xf32> to vector<8x1xf32>
    %369 = arith.addf %366, %368 : vector<8x1xf32>
    %c0_149 = arith.constant 0 : index
    %c0_150 = arith.constant 0 : index
    %370 = vector.load %arg7[%c0_149, %c0_150] : memref<8x1xf32, #tpu.memory_space<vmem>>, vector<8x1xf32>
    tpu.vector_store %arg7[%c0_149, %c0_150], %369 {strides = array<i32>} : memref<8x1xf32, #tpu.memory_space<vmem>>, vector<8x1xf32>,
    return
  }
  func.func @transform_0(%arg0: i32) -> (i32, i32, i32) {
    %c0_i32 = arith.constant 0 : i32
    %c0_i32_0 = arith.constant 0 : i32
    %c0_i32_1 = arith.constant 0 : i32
    %c0_i32_2 = arith.constant 0 : i32
    return %c0_i32, %c0_i32_0, %c0_i32_1 : i32, i32, i32
  }
  func.func @transform_1(%arg0: i32) -> (i32, i32) {
    %c0_i32 = arith.constant 0 : i32
    %c0_i32_0 = arith.constant 0 : i32
    %c0_i32_1 = arith.constant 0 : i32
    return %c0_i32, %c0_i32_0 : i32, i32
  }
  func.func @transform_2(%arg0: i32) -> (i32, i32) {
    %c0_i32 = arith.constant 0 : i32
    %c0_i32_0 = arith.constant 0 : i32
    %c0_i32_1 = arith.constant 0 : i32
    return %c0_i32, %c0_i32_0 : i32, i32
  }
  func.func @transform_3(%arg0: i32) -> (i32, i32) {
    %c0_i32 = arith.constant 0 : i32
    %c0_i32_0 = arith.constant 0 : i32
    %c0_i32_1 = arith.constant 0 : i32
    return %c0_i32, %c0_i32_0 : i32, i32
  }
  func.func @transform_4(%arg0: i32) -> (i32, i32) {
    %c0_i32 = arith.constant 0 : i32
    %c0_i32_0 = arith.constant 0 : i32
    %c0_i32_1 = arith.constant 0 : i32
    return %c0_i32, %c0_i32_0 : i32, i32
  }
  func.func @transform_5(%arg0: i32) -> (i32, i32) {
    %c0_i32 = arith.constant 0 : i32
    %c0_i32_0 = arith.constant 0 : i32
    %c0_i32_1 = arith.constant 0 : i32
    return %c0_i32, %c0_i32_0 : i32, i32
  }
  func.func @transform_6(%arg0: i32) -> (i32, i32) {
    %c0_i32 = arith.constant 0 : i32
    %c0_i32_0 = arith.constant 0 : i32
    %c0_i32_1 = arith.constant 0 : i32
    return %c0_i32, %c0_i32_0 : i32, i32
  }
}

</mosaic_0001>

<bundles_post_ra>
// kernel: tpu_custom_call.1
= control target key start
LH: loop header
LB: loop body
LE: loop exit
PB: predicated region body
PF: predicated region fallthrough
CT: control target
= control target key end

     0   :  { %s2014_s0 = inlined_call_operand.vmem [shape: f32[8,8,1], index: 0, kind: input, shape index: {}]   ;;  %s2015_s1 = inlined_call_operand.vmem [shape: f32[1,512], index: 1, kind: input, shape index: {}]   ;;  %s2016_s2 = inlined_call_operand.vmem [shape: f32[1,512], index: 2, kind: input, shape index: {}]   ;;  %s2017_s3 = inlined_call_operand.hbm [shape: bf16[128,512], index: 3, kind: input, shape index: {}]   ;;  %s2018_s4 = inlined_call_operand.vmem [shape: f32[1,128], index: 4, kind: input, shape index: {}]   ;;  %s2019_s5 = inlined_call_operand.<no memory space> [shape: f32[1,1], index: 5, kind: input, shape index: {}]   ;;  %s2020_s6 = inlined_call_operand.vmem [shape: f32[8,1], index: 6, kind: output, shape index: {}]  }
   0x1   :  { %v11_v0 = vstv %s2019_s5 }
   0x2   :  { %12 = vst [vmem:[#allocation2] sm:$0x1] %v11_v0 }
   0x3   :  { %13 = vsyncpa [#allocation4], 0  ;;  %s1488_s23 = smov [#allocation3]  }
   0x4   :  { %s25_s24 = sshll.u32 %s1488_s23, 4  ;;  %s26_s24 = int_to_ptr.vmem [resolvable:$true] %s25_s24 }
   0x5   :  { %s1474_s25 = scalar_lea.vmem %s26_s24, 4096  ;;  %p1479_p1 = scmp.lt.s32.totalorder %s26_s24, %s26_s24 }
   0x6   :  { %p1475_p0 = scmp.ne.s32.totalorder %s26_s24, %s1474_s25  ;;  %p1480_p2 = scmp.lt.s32.totalorder %s1474_s25, %s1474_s25 }
   0x8   :  { %p1481_p3 = por %p1480_p2, %p1479_p1 }
   0xa   :  { %p1482_p4 = pnand %p1481_p3, %p1475_p0 }
   0xc   :  { %1485 = shalt.err (!%p1482_p4)
}
   0xd   :  { %s1489_s26 = smov 256   ;;  %s1490_s27 = smov 16  }
   0xe   :  { %31 = dma.hbm_to_vmem [thread:$0]  %s2017_s3, 4096, %s26_s24, [#allocation4], %s1489_s26, %s1489_s26, %s1490_s27  }
   0xf   :  { %1486 = dma.done.wait [#allocation4], 4096  }
  0x10   :  { %1487 = vsyncadd [#allocation4], 4294963200  ;;  %v1491_v1 = vmov 0   ;;  %v1537_v2 = vld [vmem:[#allocation3 + $0xe4] ss:$16 sps:$4 sm:$0xff]   ;;  %v48_v38 = vlaneseq  ;;  %vm1252_vm0 = vcmask 7168  }
  0x11   :  { %322 = vmatprep.mubr.bf16.mxu0 %v1491_v1  ;;  %363 = vmatprep.mubr.bf16.mxu1 %v1491_v1  ;;  %v1539_v3 = vld [vmem:[#allocation3 + $0xec] ss:$16 sps:$4 sm:$0xff]   ;;  %v1542_v4 = vld [vmem:[#allocation3 + $0xe0] ss:$16 sps:$4 sm:$0xff]   ;;  %v1544_v5 = vld [vmem:[#allocation3 + $0xe8] ss:$16 sps:$4 sm:$0xff]  }
  0x12   :  { %1304 = vset.pattern.permute.xlu0 %v1491_v1  ;;  %1305 = vset.pattern.permute.xlu1 %v1491_v1  ;;  %v1547_v6 = vld [vmem:[#allocation3 + $0xc4] ss:$16 sps:$4 sm:$0xff]   ;;  %v1551_v7 = vld [vmem:[#allocation3 + $0xcc] ss:$16 sps:$4 sm:$0xff]   ;;  %v1553_v8 = vld [vmem:[#allocation3 + $0xc0] ss:$16 sps:$4 sm:$0xff]  }
  0x13   :  { %290 = vmatprep.subr.bf16.mxu0 %v1537_v2  ;;  %331 = vmatprep.subr.bf16.mxu1 %v1539_v3  ;;  %v1556_v9 = vld [vmem:[#allocation3 + $0xc8] ss:$16 sps:$4 sm:$0xff]   ;;  %v1559_v10 = vld [vmem:[#allocation3 + $0xa4] ss:$16 sps:$4 sm:$0xff]   ;;  %v1561_v11 = vld [vmem:[#allocation3 + $0xac] ss:$16 sps:$4 sm:$0xff]  }
  0x14   :  { %291 = vmatpush1.bf16.msra.mxu0 %v1542_v4  ;;  %332 = vmatpush1.bf16.msra.mxu1 %v1544_v5  ;;  %v1563_v12 = vld [vmem:[#allocation3 + $0xa0] ss:$16 sps:$4 sm:$0xff]   ;;  %v1565_v13 = vld [vmem:[#allocation3 + $0xa8] ss:$16 sps:$4 sm:$0xff]   ;;  %v1569_v14 = vld [vmem:[#allocation3 + $0x84] ss:$16 sps:$4 sm:$0xff]  }
  0x15   :  { %292 = vmatprep.subr.bf16.mxu0 %v1547_v6  ;;  %333 = vmatprep.subr.bf16.mxu1 %v1551_v7  ;;  %v1573_v15 = vld [vmem:[#allocation3 + $0x8c] ss:$16 sps:$4 sm:$0xff]   ;;  %v1575_v16 = vld [vmem:[#allocation3 + $0x80] ss:$16 sps:$4 sm:$0xff]   ;;  %v1579_v17 = vld [vmem:[#allocation3 + $0x88] ss:$16 sps:$4 sm:$0xff]  }
  0x16   :  { %v1581_v18 = vld [vmem:[#allocation3 + $0x64] ss:$16 sps:$4 sm:$0xff]   ;;  %v1585_v19 = vld [vmem:[#allocation3 + $0x6c] ss:$16 sps:$4 sm:$0xff]   ;;  %v1587_v20 = vld [vmem:[#allocation3 + $0x60] ss:$16 sps:$4 sm:$0xff]  }
  0x17   :  { %v1589_v21 = vld [vmem:[#allocation3 + $0x68] ss:$16 sps:$4 sm:$0xff]   ;;  %v1593_v22 = vld [vmem:[#allocation3 + $0x44] ss:$16 sps:$4 sm:$0xff]   ;;  %v1597_v23 = vld [vmem:[#allocation3 + $0x4c] ss:$16 sps:$4 sm:$0xff]  }
  0x18   :  { %293 = vmatpush1.bf16.msra.mxu0 %v1553_v8  ;;  %334 = vmatpush1.bf16.msra.mxu1 %v1556_v9  ;;  %v1601_v24 = vld [vmem:[#allocation3 + $0x40] ss:$16 sps:$4 sm:$0xff]   ;;  %v1603_v25 = vld [vmem:[#allocation3 + $0x48] ss:$16 sps:$4 sm:$0xff]   ;;  %v1607_v26 = vld [vmem:[#allocation3 + $0x24] ss:$16 sps:$4 sm:$0xff]  }
  0x19   :  { %294 = vmatprep.subr.bf16.mxu0 %v1559_v10  ;;  %335 = vmatprep.subr.bf16.mxu1 %v1561_v11  ;;  %v1609_v27 = vld [vmem:[#allocation3 + $0x2c] ss:$16 sps:$4 sm:$0xff]   ;;  %v1619_v30 = vld [vmem:[#allocation3 + $0x20] ss:$16 sps:$4 sm:$0xff]   ;;  %v1621_v31 = vld [vmem:[#allocation3 + $0x28] ss:$16 sps:$4 sm:$0xff]  }
  0x1a   :  { %v40_v28 = vld [vmem:[%s2014_s0] sm:$0xff]  ;;  %v1291_v29 = vld [vmem:[%s2014_s0 + $0x8] sm:$0xff]  ;;  %v1296_v37 = vld [vmem:[%s2014_s0 + $0x30] sm:$0xff]  ;;  %v49_v39 = vshrl.u32 %v48_v38, 7 }
  0x1b   :  { %44 = vperm.xlu0 %1304, %v40_v28   ;;  %v1625_v32 = vld [vmem:[#allocation3 + $0x4] ss:$16 sps:$4 sm:$0xff]   ;;  %v1627_v33 = vld [vmem:[#allocation3 + $0xc] ss:$16 sps:$4 sm:$0xff]   ;;  %v1634_v35 = vld [vmem:[#allocation3] ss:$16 sps:$4 sm:$0xff]  }
  0x1c   :  { %295 = vmatpush1.bf16.msra.mxu0 %v1563_v12  ;;  %336 = vmatpush1.bf16.msra.mxu1 %v1565_v13  ;;  %v1294_v34 = vld [vmem:[%s2014_s0 + $0x20] sm:$0xff]  ;;  %v1636_v36 = vld [vmem:[#allocation3 + $0x8] ss:$16 sps:$4 sm:$0xff]   ;;  %v50_v40 = vsub.s32 0, %v49_v39  ;;  %v54_v42 = vsub.s32 1, %v49_v39  ;;  %v58_v45 = vsub.s32 2, %v49_v39 }
  0x1d   :  { %296 = vmatprep.subr.bf16.mxu0 %v1569_v14  ;;  %337 = vmatprep.subr.bf16.mxu1 %v1573_v15  ;;  %v41_v41 = vld [vmem:[%s2015_s1] sm:$0xf]  ;;  %v62_v54 = vsub.s32 3, %v49_v39 }
  0x1e   :  { %v1686_v43 = vrot.slane %v41_v41, %v50_v40  ;;  %v72_v44 = vld [vmem:[%s2016_s2] sm:$0xf]  ;;  %v1691_v46 = vrot.slane %v41_v41, %v54_v42  ;;  %v1696_v50 = vrot.slane %v41_v41, %v58_v45 }
  0x1f   :  { %398 = vperm.xlu0 %1304, %v1291_v29   ;;  %v1694_v49 = vrot.slane %v72_v44, %v50_v40  ;;  %v1699_v52 = vrot.slane %v72_v44, %v54_v42  ;;  %v1703_v56 = vrot.slane %v72_v44, %v58_v45  ;;  %v1706_v61 = vrot.slane %v41_v41, %v62_v54 }
  0x20   :  { %297 = vmatpush1.bf16.msra.mxu0 %v1575_v16  ;;  %338 = vmatpush1.bf16.msra.mxu1 %v1579_v17  ;;  %v1710_v40 = vrot.slane %v72_v44, %v62_v54 }
  0x21   :  { %298 = vmatprep.subr.bf16.mxu0 %v1581_v18  ;;  %339 = vmatprep.subr.bf16.mxu1 %v1585_v19 }
  0x23   :  { %758 = vperm.xlu0 %1304, %v1294_v34  }
  0x24   :  { %299 = vmatpush1.bf16.msra.mxu0 %v1587_v20  ;;  %340 = vmatpush1.bf16.msra.mxu1 %v1589_v21 }
  0x25   :  { %300 = vmatprep.subr.bf16.mxu0 %v1593_v22  ;;  %341 = vmatprep.subr.bf16.mxu1 %v1597_v23 }
  0x27   :  { %998 = vperm.xlu0 %1304, %v1296_v37  }
  0x28   :  { %301 = vmatpush1.bf16.msra.mxu0 %v1601_v24  ;;  %342 = vmatpush1.bf16.msra.mxu1 %v1603_v25 }
  0x29   :  { %302 = vmatprep.subr.bf16.mxu0 %v1607_v26  ;;  %343 = vmatprep.subr.bf16.mxu1 %v1609_v27 }
  0x2c   :  { %303 = vmatpush1.bf16.msra.mxu0 %v1619_v30  ;;  %344 = vmatpush1.bf16.msra.mxu1 %v1621_v31 }
  0x2d   :  { %304 = vmatprep.subr.bf16.mxu0 %v1625_v32  ;;  %345 = vmatprep.subr.bf16.mxu1 %v1627_v33 }
  0x30   :  { %305 = vmatpush1.bf16.msra.mxu0 %v1634_v35  ;;  %346 = vmatpush1.bf16.msra.mxu1 %v1636_v36 }
  0x31   :  { %410 = vmatprep.subr.bf16.mxu0 %v1537_v2  ;;  %451 = vmatprep.subr.bf16.mxu1 %v1539_v3 }
  0x33   :  { %323 = vmatmul.mubr.bf16.vlgmr.msra.gmra.mxu0 %v1491_v1  ;;  %364 = vmatmul.mubr.bf16.vlgmr.msra.gmra.mxu1 %v1491_v1 }
  0x34   :  { %411 = vmatpush1.bf16.msra.mxu0 %v1542_v4  ;;  %452 = vmatpush1.bf16.msra.mxu1 %v1544_v5 }
  0x35   :  { %412 = vmatprep.subr.bf16.mxu0 %v1547_v6  ;;  %453 = vmatprep.subr.bf16.mxu1 %v1551_v7 }
  0x36   :  { %442 = vmatprep.mubr.bf16.mxu0 %v1491_v1  ;;  %483 = vmatprep.mubr.bf16.mxu1 %v1491_v1 }
  0x38   :  { %413 = vmatpush1.bf16.msra.mxu0 %v1553_v8  ;;  %454 = vmatpush1.bf16.msra.mxu1 %v1556_v9 }
  0x39   :  { %414 = vmatprep.subr.bf16.mxu0 %v1559_v10  ;;  %455 = vmatprep.subr.bf16.mxu1 %v1561_v11 }
  0x3c   :  { %415 = vmatpush1.bf16.msra.mxu0 %v1563_v12  ;;  %456 = vmatpush1.bf16.msra.mxu1 %v1565_v13 }
  0x3d   :  { %416 = vmatprep.subr.bf16.mxu0 %v1569_v14  ;;  %457 = vmatprep.subr.bf16.mxu1 %v1573_v15 }
  0x40   :  { %417 = vmatpush1.bf16.msra.mxu0 %v1575_v16  ;;  %458 = vmatpush1.bf16.msra.mxu1 %v1579_v17 }
  0x41   :  { %418 = vmatprep.subr.bf16.mxu0 %v1581_v18  ;;  %459 = vmatprep.subr.bf16.mxu1 %v1585_v19 }
  0x44   :  { %419 = vmatpush1.bf16.msra.mxu0 %v1587_v20  ;;  %460 = vmatpush1.bf16.msra.mxu1 %v1589_v21 }
  0x45   :  { %420 = vmatprep.subr.bf16.mxu0 %v1593_v22  ;;  %461 = vmatprep.subr.bf16.mxu1 %v1597_v23 }
  0x48   :  { %421 = vmatpush1.bf16.msra.mxu0 %v1601_v24  ;;  %462 = vmatpush1.bf16.msra.mxu1 %v1603_v25 }
  0x49   :  { %422 = vmatprep.subr.bf16.mxu0 %v1607_v26  ;;  %463 = vmatprep.subr.bf16.mxu1 %v1609_v27 }
  0x4c   :  { %423 = vmatpush1.bf16.msra.mxu0 %v1619_v30  ;;  %464 = vmatpush1.bf16.msra.mxu1 %v1621_v31 }
  0x4d   :  { %424 = vmatprep.subr.bf16.mxu0 %v1625_v32  ;;  %465 = vmatprep.subr.bf16.mxu1 %v1627_v33 }
  0x50   :  { %425 = vmatpush1.bf16.msra.mxu0 %v1634_v35  ;;  %466 = vmatpush1.bf16.msra.mxu1 %v1636_v36 }
  0x51   :  { %530 = vmatprep.subr.bf16.mxu0 %v1537_v2  ;;  %571 = vmatprep.subr.bf16.mxu1 %v1539_v3 }
  0x96   :  { %v45_v47 = vpop.permute.xlu0 %44 }
  0x97   :  { %v68_v48 = vmul.f32 %v1686_v43, %v45_v47  ;;  %v69_v51 = vmul.f32 %v1691_v46, %v45_v47  ;;  %v70_v55 = vmul.f32 %v1696_v50, %v45_v47  ;;  %v71_v39 = vmul.f32 %v1706_v61, %v45_v47 }
  0x99   :  { %v94_v53 = vadd.f32 %v1694_v49, %v68_v48  ;;  %v95_v57 = vadd.f32 %v1699_v52, %v69_v51  ;;  %v96_v28 = vadd.f32 %v1703_v56, %v70_v55  ;;  %v97_v41 = vadd.f32 %v1710_v40, %v71_v39  ;;  %v1292_v39 = vld [vmem:[%s2014_s0 + $0x10] sm:$0xff] }
  0x9a   :  { %518 = vperm.xlu1 %1305, %v1292_v39  }
  0xf3   :  { %v324_v58 = vpop.f32.mrf.mxu0  ;;  %v365_v59 = vpop.f32.mrf.mxu1 }
  0xf4   :  { %v372_v60 = vadd.f32 %v324_v58, %v94_v53  ;;  %v374_v48 = vadd.f32 %v365_v59, %v96_v28 }
  0xf5   :  { %v326_v62 = vpop.f32.mrf.mxu0  ;;  %v367_v63 = vpop.f32.mrf.mxu1 }
  0xf6   :  { %v376_v0 = vmul.f32 0.5, %v372_v60  ;;  %v373_v29 = vadd.f32 %v326_v62, %v95_v57  ;;  %v375_v51 = vadd.f32 %v367_v63, %v97_v41  ;;  %v399_v41 = vpop.permute.xlu0 %398 }
  0xf7   :  { %v328_v34 = vpop.f32.mrf.mxu0  ;;  %v369_v37 = vpop.f32.mrf.mxu1 }
  0xf8   :  { %1354 = vtanh.f32 %v376_v0  ;;  %v380_v38 = vmul.f32 0.5, %v373_v29  ;;  %v385_v53 = vmul.f32 0.5, %v375_v51  ;;  %v401_v51 = vmul.f32 %v399_v41, %v1686_v43 }
  0xf9   :  { %v329_v42 = vpop.f32.mrf.mxu0  ;;  %v370_v45 = vpop.f32.mrf.mxu1 }
  0xfa   :  { %1356 = vtanh.f32 %v380_v38  ;;  %v1293_v42 = vld [vmem:[%s2014_s0 + $0x18] sm:$0xff]  ;;  %v1295_v45 = vld [vmem:[%s2014_s0 + $0x28] sm:$0xff] }
  0xfb   :  { %1358 = vtanh.f32 %v374_v48  ;;  %638 = vperm.xlu1 %1305, %v1293_v42   ;;  %v1297_v48 = vld [vmem:[%s2014_s0 + $0x38] sm:$0xff] }
  0xfc   :  { %1360 = vtanh.f32 %v385_v53  ;;  %v402_v53 = vmul.f32 %v399_v41, %v1691_v46 }
  0xff   :  { %878 = vperm.xlu1 %1305, %v1295_v45   ;;  %v404_v45 = vmul.f32 %v399_v41, %v1706_v61 }
 0x103   :  { %1118 = vperm.xlu1 %1305, %v1297_v48   ;;  %v408_v48 = vadd.f32 %v404_v45, %v1710_v40 }
 0x105   :  { %v1355_v58 = vpop.eup %1354 }
 0x106   :  { %v378_v55 = vadd.f32 1.0, %v1355_v58  ;;  %v405_v58 = vadd.f32 %v401_v51, %v1694_v49 }
 0x107   :  { %v1357_v57 = vpop.eup %1356 }
 0x108   :  { %v379_v60 = vmul.f32 0.5, %v378_v55  ;;  %v382_v62 = vadd.f32 1.0, %v1357_v57  ;;  %v1359_v29 = vpop.eup %1358 }
 0x109   :  { %v1361_v59 = vpop.eup %1360 }
 0x10a   :  { %v383_v0 = vmul.f32 0.5, %v382_v62  ;;  %v390_v44 = vmul.f32 %v1359_v29, %v379_v60  ;;  %v387_v28 = vadd.f32 1.0, %v1361_v59  ;;  %v403_v62 = vmul.f32 %v399_v41, %v1696_v50 }
 0x10c   :  { %v389_v47 = vmul.f32 0.0, %v383_v0  ;;  %v388_v34 = vmul.f32 0.5, %v387_v28  ;;  %v406_v0 = vadd.f32 %v402_v53, %v1699_v52 }
 0x10e   :  { %v1713_v54 = vadd.f32 %v390_v44, %v389_v47 }
 0x110   :  { %1362 = vtanh.f32 %v1713_v54 }
 0x11d   :  { %v1363_v37 = vpop.eup %1362 }
 0x11e   :  { %v393_v63 = vmul.f32 %v1363_v37, %v388_v34  ;;  %v407_v37 = vadd.f32 %v403_v62, %v1703_v56 }
 0x120   :  { %v409_v38 = vpack.c.bf16 %v393_v63, %v393_v63 }
 0x122   :  { %443 = vmatmul.mubr.bf16.vlgmr.msra.gmra.mxu0 %v409_v38  ;;  %484 = vmatmul.mubr.bf16.vlgmr.msra.gmra.mxu1 %v409_v38 }
 0x123   :  { %531 = vmatpush1.bf16.msra.mxu0 %v1542_v4  ;;  %572 = vmatpush1.bf16.msra.mxu1 %v1544_v5 }
 0x124   :  { %532 = vmatprep.subr.bf16.mxu0 %v1547_v6  ;;  %573 = vmatprep.subr.bf16.mxu1 %v1551_v7 }
 0x125   :  { %562 = vmatprep.mubr.bf16.mxu0 %v1491_v1  ;;  %603 = vmatprep.mubr.bf16.mxu1 %v1491_v1 }
 0x127   :  { %533 = vmatpush1.bf16.msra.mxu0 %v1553_v8  ;;  %574 = vmatpush1.bf16.msra.mxu1 %v1556_v9 }
 0x128   :  { %534 = vmatprep.subr.bf16.mxu0 %v1559_v10  ;;  %575 = vmatprep.subr.bf16.mxu1 %v1561_v11 }
 0x12b   :  { %535 = vmatpush1.bf16.msra.mxu0 %v1563_v12  ;;  %576 = vmatpush1.bf16.msra.mxu1 %v1565_v13 }
 0x12c   :  { %536 = vmatprep.subr.bf16.mxu0 %v1569_v14  ;;  %577 = vmatprep.subr.bf16.mxu1 %v1573_v15 }
 0x12f   :  { %537 = vmatpush1.bf16.msra.mxu0 %v1575_v16  ;;  %578 = vmatpush1.bf16.msra.mxu1 %v1579_v17 }
 0x130   :  { %538 = vmatprep.subr.bf16.mxu0 %v1581_v18  ;;  %579 = vmatprep.subr.bf16.mxu1 %v1585_v19 }
 0x133   :  { %539 = vmatpush1.bf16.msra.mxu0 %v1587_v20  ;;  %580 = vmatpush1.bf16.msra.mxu1 %v1589_v21 }
 0x134   :  { %540 = vmatprep.subr.bf16.mxu0 %v1593_v22  ;;  %581 = vmatprep.subr.bf16.mxu1 %v1597_v23 }
 0x137   :  { %541 = vmatpush1.bf16.msra.mxu0 %v1601_v24  ;;  %582 = vmatpush1.bf16.msra.mxu1 %v1603_v25 }
 0x138   :  { %542 = vmatprep.subr.bf16.mxu0 %v1607_v26  ;;  %583 = vmatprep.subr.bf16.mxu1 %v1609_v27 }
 0x13b   :  { %543 = vmatpush1.bf16.msra.mxu0 %v1619_v30  ;;  %584 = vmatpush1.bf16.msra.mxu1 %v1621_v31 }
 0x13c   :  { %544 = vmatprep.subr.bf16.mxu0 %v1625_v32  ;;  %585 = vmatprep.subr.bf16.mxu1 %v1627_v33 }
 0x13f   :  { %545 = vmatpush1.bf16.msra.mxu0 %v1634_v35  ;;  %586 = vmatpush1.bf16.msra.mxu1 %v1636_v36 }
 0x140   :  { %650 = vmatprep.subr.bf16.mxu0 %v1537_v2  ;;  %691 = vmatprep.subr.bf16.mxu1 %v1539_v3 }
 0x1e2   :  { %v444_v55 = vpop.f32.mrf.mxu0  ;;  %v485_v57 = vpop.f32.mrf.mxu1 }
 0x1e3   :  { %v492_v60 = vadd.f32 %v444_v55, %v405_v58  ;;  %v494_v42 = vadd.f32 %v485_v57, %v407_v37 }
 0x1e4   :  { %v446_v29 = vpop.f32.mrf.mxu0  ;;  %v487_v47 = vpop.f32.mrf.mxu1 }
 0x1e5   :  { %v496_v44 = vmul.f32 0.5, %v492_v60  ;;  %v493_v59 = vadd.f32 %v446_v29, %v406_v0  ;;  %v495_v51 = vadd.f32 %v487_v47, %v408_v48 }
 0x1e6   :  { %v448_v28 = vpop.f32.mrf.mxu0  ;;  %v489_v34 = vpop.f32.mrf.mxu1 }
 0x1e7   :  { %1364 = vtanh.f32 %v496_v44  ;;  %v500_v63 = vmul.f32 0.5, %v493_v59  ;;  %v505_v53 = vmul.f32 0.5, %v495_v51 }
 0x1e8   :  { %v449_v38 = vpop.f32.mrf.mxu0  ;;  %v490_v39 = vpop.f32.mrf.mxu1 }
 0x1e9   :  { %1366 = vtanh.f32 %v500_v63 }
 0x1ea   :  { %1368 = vtanh.f32 %v494_v42 }
 0x1eb   :  { %1370 = vtanh.f32 %v505_v53 }
 0x1f4   :  { %v1365_v58 = vpop.eup %1364 }
 0x1f5   :  { %v498_v55 = vadd.f32 1.0, %v1365_v58 }
 0x1f6   :  { %v1367_v60 = vpop.eup %1366 }
 0x1f7   :  { %v499_v0 = vmul.f32 0.5, %v498_v55  ;;  %v502_v29 = vadd.f32 1.0, %v1367_v60  ;;  %v1369_v62 = vpop.eup %1368 }
 0x1f8   :  { %v1371_v41 = vpop.eup %1370 }
 0x1f9   :  { %v503_v44 = vmul.f32 0.5, %v502_v29  ;;  %v510_v28 = vmul.f32 %v1369_v62, %v499_v0  ;;  %v507_v34 = vadd.f32 1.0, %v1371_v41 }
 0x1fb   :  { %v509_v59 = vmul.f32 %v503_v44, %v1713_v54  ;;  %v508_v37 = vmul.f32 0.5, %v507_v34  ;;  %v519_v54 = vpop.permute.xlu1 %518 }
 0x1fc   :  { %v521_v39 = vmul.f32 %v519_v54, %v1686_v43  ;;  %v522_v42 = vmul.f32 %v519_v54, %v1691_v46  ;;  %v523_v48 = vmul.f32 %v519_v54, %v1696_v50  ;;  %v524_v34 = vmul.f32 %v519_v54, %v1706_v61 }
 0x1fd   :  { %v1771_v57 = vadd.f32 %v510_v28, %v509_v59 }
 0x1fe   :  { %v525_v45 = vadd.f32 %v521_v39, %v1694_v49  ;;  %v526_v51 = vadd.f32 %v522_v42, %v1699_v52  ;;  %v527_v44 = vadd.f32 %v523_v48, %v1703_v56 }
 0x1ff   :  { %1372 = vtanh.f32 %v1771_v57 }
 0x20c   :  { %v1373_v47 = vpop.eup %1372 }
 0x20d   :  { %v513_v63 = vmul.f32 %v1373_v47, %v508_v37 }
 0x20f   :  { %v529_v38 = vpack.c.bf16 %v513_v63, %v513_v63 }
 0x211   :  { %563 = vmatmul.mubr.bf16.vlgmr.msra.gmra.mxu0 %v529_v38  ;;  %604 = vmatmul.mubr.bf16.vlgmr.msra.gmra.mxu1 %v529_v38  ;;  %v528_v38 = vadd.f32 %v524_v34, %v1710_v40 }
 0x212   :  { %651 = vmatpush1.bf16.msra.mxu0 %v1542_v4  ;;  %692 = vmatpush1.bf16.msra.mxu1 %v1544_v5 }
 0x213   :  { %652 = vmatprep.subr.bf16.mxu0 %v1547_v6  ;;  %693 = vmatprep.subr.bf16.mxu1 %v1551_v7 }
 0x214   :  { %682 = vmatprep.mubr.bf16.mxu0 %v1491_v1  ;;  %723 = vmatprep.mubr.bf16.mxu1 %v1491_v1 }
 0x216   :  { %653 = vmatpush1.bf16.msra.mxu0 %v1553_v8  ;;  %694 = vmatpush1.bf16.msra.mxu1 %v1556_v9 }
 0x217   :  { %654 = vmatprep.subr.bf16.mxu0 %v1559_v10  ;;  %695 = vmatprep.subr.bf16.mxu1 %v1561_v11 }
 0x21a   :  { %655 = vmatpush1.bf16.msra.mxu0 %v1563_v12  ;;  %696 = vmatpush1.bf16.msra.mxu1 %v1565_v13 }
 0x21b   :  { %656 = vmatprep.subr.bf16.mxu0 %v1569_v14  ;;  %697 = vmatprep.subr.bf16.mxu1 %v1573_v15 }
 0x21e   :  { %657 = vmatpush1.bf16.msra.mxu0 %v1575_v16  ;;  %698 = vmatpush1.bf16.msra.mxu1 %v1579_v17 }
 0x21f   :  { %658 = vmatprep.subr.bf16.mxu0 %v1581_v18  ;;  %699 = vmatprep.subr.bf16.mxu1 %v1585_v19 }
 0x222   :  { %659 = vmatpush1.bf16.msra.mxu0 %v1587_v20  ;;  %700 = vmatpush1.bf16.msra.mxu1 %v1589_v21 }
 0x223   :  { %660 = vmatprep.subr.bf16.mxu0 %v1593_v22  ;;  %701 = vmatprep.subr.bf16.mxu1 %v1597_v23 }
 0x226   :  { %661 = vmatpush1.bf16.msra.mxu0 %v1601_v24  ;;  %702 = vmatpush1.bf16.msra.mxu1 %v1603_v25 }
 0x227   :  { %662 = vmatprep.subr.bf16.mxu0 %v1607_v26  ;;  %703 = vmatprep.subr.bf16.mxu1 %v1609_v27 }
 0x22a   :  { %663 = vmatpush1.bf16.msra.mxu0 %v1619_v30  ;;  %704 = vmatpush1.bf16.msra.mxu1 %v1621_v31 }
 0x22b   :  { %664 = vmatprep.subr.bf16.mxu0 %v1625_v32  ;;  %705 = vmatprep.subr.bf16.mxu1 %v1627_v33 }
 0x22e   :  { %665 = vmatpush1.bf16.msra.mxu0 %v1634_v35  ;;  %706 = vmatpush1.bf16.msra.mxu1 %v1636_v36 }
 0x22f   :  { %770 = vmatprep.subr.bf16.mxu0 %v1537_v2  ;;  %811 = vmatprep.subr.bf16.mxu1 %v1539_v3 }
 0x2d1   :  { %v564_v53 = vpop.f32.mrf.mxu0  ;;  %v605_v58 = vpop.f32.mrf.mxu1 }
 0x2d2   :  { %v612_v55 = vadd.f32 %v564_v53, %v525_v45  ;;  %v614_v63 = vadd.f32 %v605_v58, %v527_v44 }
 0x2d3   :  { %v566_v60 = vpop.f32.mrf.mxu0  ;;  %v607_v0 = vpop.f32.mrf.mxu1 }
 0x2d4   :  { %v616_v29 = vmul.f32 0.5, %v612_v55  ;;  %v613_v62 = vadd.f32 %v566_v60, %v526_v51  ;;  %v615_v39 = vadd.f32 %v607_v0, %v528_v38 }
 0x2d5   :  { %v568_v59 = vpop.f32.mrf.mxu0  ;;  %v609_v28 = vpop.f32.mrf.mxu1 }
 0x2d6   :  { %1374 = vtanh.f32 %v616_v29  ;;  %v620_v41 = vmul.f32 0.5, %v613_v62  ;;  %v625_v42 = vmul.f32 0.5, %v615_v39 }
 0x2d7   :  { %v569_v37 = vpop.f32.mrf.mxu0  ;;  %v610_v47 = vpop.f32.mrf.mxu1 }
 0x2d8   :  { %1376 = vtanh.f32 %v620_v41 }
 0x2d9   :  { %1378 = vtanh.f32 %v614_v63 }
 0x2da   :  { %1380 = vtanh.f32 %v625_v42 }
 0x2e3   :  { %v1375_v45 = vpop.eup %1374 }
 0x2e4   :  { %v618_v53 = vadd.f32 1.0, %v1375_v45 }
 0x2e5   :  { %v1377_v55 = vpop.eup %1376 }
 0x2e6   :  { %v619_v48 = vmul.f32 0.5, %v618_v53  ;;  %v622_v51 = vadd.f32 1.0, %v1377_v55  ;;  %v1379_v29 = vpop.eup %1378 }
 0x2e7   :  { %v1381_v58 = vpop.eup %1380 }
 0x2e8   :  { %v623_v60 = vmul.f32 0.5, %v622_v51  ;;  %v630_v54 = vmul.f32 %v1379_v29, %v619_v48  ;;  %v627_v44 = vadd.f32 1.0, %v1381_v58 }
 0x2ea   :  { %v629_v62 = vmul.f32 %v623_v60, %v1771_v57  ;;  %v628_v28 = vmul.f32 0.5, %v627_v44  ;;  %v639_v57 = vpop.permute.xlu1 %638 }
 0x2eb   :  { %v641_v37 = vmul.f32 %v639_v57, %v1686_v43  ;;  %v642_v47 = vmul.f32 %v639_v57, %v1691_v46  ;;  %v643_v45 = vmul.f32 %v639_v57, %v1696_v50 }
 0x2ec   :  { %v1817_v59 = vadd.f32 %v630_v54, %v629_v62 }
 0x2ed   :  { %v645_v63 = vadd.f32 %v641_v37, %v1694_v49  ;;  %v646_v53 = vadd.f32 %v642_v47, %v1699_v52  ;;  %v647_v54 = vadd.f32 %v643_v45, %v1703_v56 }
 0x2ee   :  { %1382 = vtanh.f32 %v1817_v59 }
 0x2fb   :  { %v1383_v0 = vpop.eup %1382 }
 0x2fc   :  { %v633_v41 = vmul.f32 %v1383_v0, %v628_v28 }
 0x2fe   :  { %v649_v34 = vpack.c.bf16 %v633_v41, %v633_v41  ;;  %v644_v41 = vmul.f32 %v639_v57, %v1706_v61 }
 0x300   :  { %683 = vmatmul.mubr.bf16.vlgmr.msra.gmra.mxu0 %v649_v34  ;;  %724 = vmatmul.mubr.bf16.vlgmr.msra.gmra.mxu1 %v649_v34  ;;  %v648_v34 = vadd.f32 %v644_v41, %v1710_v40 }
 0x301   :  { %771 = vmatpush1.bf16.msra.mxu0 %v1542_v4  ;;  %812 = vmatpush1.bf16.msra.mxu1 %v1544_v5 }
 0x302   :  { %772 = vmatprep.subr.bf16.mxu0 %v1547_v6  ;;  %813 = vmatprep.subr.bf16.mxu1 %v1551_v7 }
 0x303   :  { %802 = vmatprep.mubr.bf16.mxu0 %v1491_v1  ;;  %843 = vmatprep.mubr.bf16.mxu1 %v1491_v1 }
 0x305   :  { %773 = vmatpush1.bf16.msra.mxu0 %v1553_v8  ;;  %814 = vmatpush1.bf16.msra.mxu1 %v1556_v9 }
 0x306   :  { %774 = vmatprep.subr.bf16.mxu0 %v1559_v10  ;;  %815 = vmatprep.subr.bf16.mxu1 %v1561_v11 }
 0x309   :  { %775 = vmatpush1.bf16.msra.mxu0 %v1563_v12  ;;  %816 = vmatpush1.bf16.msra.mxu1 %v1565_v13 }
 0x30a   :  { %776 = vmatprep.subr.bf16.mxu0 %v1569_v14  ;;  %817 = vmatprep.subr.bf16.mxu1 %v1573_v15 }
 0x30d   :  { %777 = vmatpush1.bf16.msra.mxu0 %v1575_v16  ;;  %818 = vmatpush1.bf16.msra.mxu1 %v1579_v17 }
 0x30e   :  { %778 = vmatprep.subr.bf16.mxu0 %v1581_v18  ;;  %819 = vmatprep.subr.bf16.mxu1 %v1585_v19 }
 0x311   :  { %779 = vmatpush1.bf16.msra.mxu0 %v1587_v20  ;;  %820 = vmatpush1.bf16.msra.mxu1 %v1589_v21 }
 0x312   :  { %780 = vmatprep.subr.bf16.mxu0 %v1593_v22  ;;  %821 = vmatprep.subr.bf16.mxu1 %v1597_v23 }
 0x315   :  { %781 = vmatpush1.bf16.msra.mxu0 %v1601_v24  ;;  %822 = vmatpush1.bf16.msra.mxu1 %v1603_v25 }
 0x316   :  { %782 = vmatprep.subr.bf16.mxu0 %v1607_v26  ;;  %823 = vmatprep.subr.bf16.mxu1 %v1609_v27 }
 0x319   :  { %783 = vmatpush1.bf16.msra.mxu0 %v1619_v30  ;;  %824 = vmatpush1.bf16.msra.mxu1 %v1621_v31 }
 0x31a   :  { %784 = vmatprep.subr.bf16.mxu0 %v1625_v32  ;;  %825 = vmatprep.subr.bf16.mxu1 %v1627_v33 }
 0x31d   :  { %785 = vmatpush1.bf16.msra.mxu0 %v1634_v35  ;;  %826 = vmatpush1.bf16.msra.mxu1 %v1636_v36 }
 0x31e   :  { %890 = vmatprep.subr.bf16.mxu0 %v1537_v2  ;;  %931 = vmatprep.subr.bf16.mxu1 %v1539_v3 }
 0x3c0   :  { %v684_v38 = vpop.f32.mrf.mxu0  ;;  %v725_v39 = vpop.f32.mrf.mxu1 }
 0x3c1   :  { %v732_v42 = vadd.f32 %v684_v38, %v645_v63  ;;  %v734_v0 = vadd.f32 %v725_v39, %v647_v54 }
 0x3c2   :  { %v686_v55 = vpop.f32.mrf.mxu0  ;;  %v727_v48 = vpop.f32.mrf.mxu1 }
 0x3c3   :  { %v736_v51 = vmul.f32 0.5, %v732_v42  ;;  %v733_v60 = vadd.f32 %v686_v55, %v646_v53  ;;  %v735_v37 = vadd.f32 %v727_v48, %v648_v34 }
 0x3c4   :  { %v688_v29 = vpop.f32.mrf.mxu0  ;;  %v729_v62 = vpop.f32.mrf.mxu1 }
 0x3c5   :  { %1384 = vtanh.f32 %v736_v51  ;;  %v740_v58 = vmul.f32 0.5, %v733_v60  ;;  %v745_v47 = vmul.f32 0.5, %v735_v37 }
 0x3c6   :  { %v689_v44 = vpop.f32.mrf.mxu0  ;;  %v730_v28 = vpop.f32.mrf.mxu1 }
 0x3c7   :  { %1386 = vtanh.f32 %v740_v58 }
 0x3c8   :  { %1388 = vtanh.f32 %v734_v0 }
 0x3c9   :  { %1390 = vtanh.f32 %v745_v47 }
 0x3d2   :  { %v1385_v63 = vpop.eup %1384 }
 0x3d3   :  { %v738_v38 = vadd.f32 1.0, %v1385_v63 }
 0x3d4   :  { %v1387_v42 = vpop.eup %1386 }
 0x3d5   :  { %v739_v53 = vmul.f32 0.5, %v738_v38  ;;  %v742_v55 = vadd.f32 1.0, %v1387_v42  ;;  %v1389_v45 = vpop.eup %1388 }
 0x3d6   :  { %v1391_v57 = vpop.eup %1390 }
 0x3d7   :  { %v743_v51 = vmul.f32 0.5, %v742_v55  ;;  %v750_v29 = vmul.f32 %v1389_v45, %v739_v53  ;;  %v747_v62 = vadd.f32 1.0, %v1391_v57 }
 0x3d9   :  { %v749_v60 = vmul.f32 %v743_v51, %v1817_v59  ;;  %v748_v54 = vmul.f32 0.5, %v747_v62 }
 0x3db   :  { %v1863_v39 = vadd.f32 %v750_v29, %v749_v60 }
 0x3dd   :  { %1392 = vtanh.f32 %v1863_v39 }
 0x3ea   :  { %v1393_v48 = vpop.eup %1392 }
 0x3eb   :  { %v753_v58 = vmul.f32 %v1393_v48, %v748_v54 }
 0x3ed   :  { %v769_v44 = vpack.c.bf16 %v753_v58, %v753_v58 }
 0x3ef   :  { %803 = vmatmul.mubr.bf16.vlgmr.msra.gmra.mxu0 %v769_v44  ;;  %844 = vmatmul.mubr.bf16.vlgmr.msra.gmra.mxu1 %v769_v44 }
 0x3f0   :  { %891 = vmatpush1.bf16.msra.mxu0 %v1542_v4  ;;  %932 = vmatpush1.bf16.msra.mxu1 %v1544_v5  ;;  %v759_v4 = vpop.permute.xlu0 %758 }
 0x3f1   :  { %892 = vmatprep.subr.bf16.mxu0 %v1547_v6  ;;  %933 = vmatprep.subr.bf16.mxu1 %v1551_v7  ;;  %v761_v5 = vmul.f32 %v759_v4, %v1686_v43  ;;  %v762_v6 = vmul.f32 %v759_v4, %v1691_v46  ;;  %v764_v63 = vmul.f32 %v759_v4, %v1706_v61 }
 0x3f2   :  { %922 = vmatprep.mubr.bf16.mxu0 %v1491_v1  ;;  %963 = vmatprep.mubr.bf16.mxu1 %v1491_v1 }
 0x3f3   :  { %v765_v7 = vadd.f32 %v761_v5, %v1694_v49  ;;  %v768_v38 = vadd.f32 %v764_v63, %v1710_v40 }
 0x3f4   :  { %893 = vmatpush1.bf16.msra.mxu0 %v1553_v8  ;;  %934 = vmatpush1.bf16.msra.mxu1 %v1556_v9 }
 0x3f5   :  { %894 = vmatprep.subr.bf16.mxu0 %v1559_v10  ;;  %935 = vmatprep.subr.bf16.mxu1 %v1561_v11  ;;  %v763_v11 = vmul.f32 %v759_v4, %v1696_v50 }
 0x3f7   :  { %v767_v0 = vadd.f32 %v763_v11, %v1703_v56  ;;  %v1921_v11 = vld [vmem:[#allocation3 + $0xcc] ss:$16 sps:$4 sm:$0xff]  }
 0x3f8   :  { %895 = vmatpush1.bf16.msra.mxu0 %v1563_v12  ;;  %936 = vmatpush1.bf16.msra.mxu1 %v1565_v13  ;;  %v766_v12 = vadd.f32 %v762_v6, %v1699_v52 }
 0x3f9   :  { %896 = vmatprep.subr.bf16.mxu0 %v1569_v14  ;;  %937 = vmatprep.subr.bf16.mxu1 %v1573_v15 }
 0x3fc   :  { %897 = vmatpush1.bf16.msra.mxu0 %v1575_v16  ;;  %938 = vmatpush1.bf16.msra.mxu1 %v1579_v17 }
 0x3fd   :  { %898 = vmatprep.subr.bf16.mxu0 %v1581_v18  ;;  %939 = vmatprep.subr.bf16.mxu1 %v1585_v19 }
 0x400   :  { %899 = vmatpush1.bf16.msra.mxu0 %v1587_v20  ;;  %940 = vmatpush1.bf16.msra.mxu1 %v1589_v21 }
 0x401   :  { %900 = vmatprep.subr.bf16.mxu0 %v1593_v22  ;;  %941 = vmatprep.subr.bf16.mxu1 %v1597_v23 }
 0x404   :  { %901 = vmatpush1.bf16.msra.mxu0 %v1601_v24  ;;  %942 = vmatpush1.bf16.msra.mxu1 %v1603_v25 }
 0x405   :  { %902 = vmatprep.subr.bf16.mxu0 %v1607_v26  ;;  %943 = vmatprep.subr.bf16.mxu1 %v1609_v27 }
 0x408   :  { %903 = vmatpush1.bf16.msra.mxu0 %v1619_v30  ;;  %944 = vmatpush1.bf16.msra.mxu1 %v1621_v31 }
 0x409   :  { %904 = vmatprep.subr.bf16.mxu0 %v1625_v32  ;;  %945 = vmatprep.subr.bf16.mxu1 %v1627_v33 }
 0x40c   :  { %905 = vmatpush1.bf16.msra.mxu0 %v1634_v35  ;;  %946 = vmatpush1.bf16.msra.mxu1 %v1636_v36 }
 0x40d   :  { %1010 = vmatprep.subr.bf16.mxu0 %v1537_v2  ;;  %1051 = vmatprep.subr.bf16.mxu1 %v1539_v3 }
 0x4af   :  { %v804_v8 = vpop.f32.mrf.mxu0  ;;  %v845_v9 = vpop.f32.mrf.mxu1 }
 0x4b0   :  { %v852_v10 = vadd.f32 %v804_v8, %v765_v7  ;;  %v854_v47 = vadd.f32 %v845_v9, %v767_v0  ;;  %v1912_v9 = vld [vmem:[#allocation3 + $0xe0] ss:$16 sps:$4 sm:$0xff]  }
 0x4b1   :  { %v806_v13 = vpop.f32.mrf.mxu0  ;;  %v847_v14 = vpop.f32.mrf.mxu1 }
 0x4b2   :  { %v856_v59 = vmul.f32 0.5, %v852_v10  ;;  %v853_v2 = vadd.f32 %v806_v13, %v766_v12  ;;  %v855_v42 = vadd.f32 %v847_v14, %v768_v38  ;;  %v1915_v10 = vld [vmem:[#allocation3 + $0xe8] ss:$16 sps:$4 sm:$0xff]   ;;  %v1926_v12 = vld [vmem:[#allocation3 + $0xc0] ss:$16 sps:$4 sm:$0xff]  }
 0x4b3   :  { %v808_v28 = vpop.f32.mrf.mxu0  ;;  %v849_v3 = vpop.f32.mrf.mxu1  ;;  %v1929_v13 = vld [vmem:[#allocation3 + $0xc8] ss:$16 sps:$4 sm:$0xff]   ;;  %v1932_v14 = vld [vmem:[#allocation3 + $0xa4] ss:$16 sps:$4 sm:$0xff]  }
 0x4b4   :  { %1394 = vtanh.f32 %v856_v59  ;;  %v860_v41 = vmul.f32 0.5, %v853_v2  ;;  %v865_v53 = vmul.f32 0.5, %v855_v42  ;;  %v1935_v59 = vld [vmem:[#allocation3 + $0xac] ss:$16 sps:$4 sm:$0xff]   ;;  %v1938_v2 = vld [vmem:[#allocation3 + $0xa0] ss:$16 sps:$4 sm:$0xff]  }
 0x4b5   :  { %v809_v34 = vpop.f32.mrf.mxu0  ;;  %v850_v37 = vpop.f32.mrf.mxu1  ;;  %v1941_v28 = vld [vmem:[#allocation3 + $0xa8] ss:$16 sps:$4 sm:$0xff]   ;;  %v1944_v3 = vld [vmem:[#allocation3 + $0x84] ss:$16 sps:$4 sm:$0xff]  }
 0x4b6   :  { %1396 = vtanh.f32 %v860_v41 }
 0x4b7   :  { %1398 = vtanh.f32 %v854_v47 }
 0x4b8   :  { %1400 = vtanh.f32 %v865_v53 }
 0x4c1   :  { %v1395_v55 = vpop.eup %1394 }
 0x4c2   :  { %v858_v51 = vadd.f32 1.0, %v1395_v55 }
 0x4c3   :  { %v1397_v45 = vpop.eup %1396 }
 0x4c4   :  { %v859_v60 = vmul.f32 0.5, %v858_v51  ;;  %v862_v29 = vadd.f32 1.0, %v1397_v45  ;;  %v1399_v62 = vpop.eup %1398 }
 0x4c5   :  { %v1401_v44 = vpop.eup %1400 }
 0x4c6   :  { %v863_v57 = vmul.f32 0.5, %v862_v29  ;;  %v870_v48 = vmul.f32 %v1399_v62, %v859_v60  ;;  %v867_v4 = vadd.f32 1.0, %v1401_v44 }
 0x4c8   :  { %v869_v54 = vmul.f32 %v863_v57, %v1863_v39  ;;  %v868_v5 = vmul.f32 0.5, %v867_v4  ;;  %v1918_v39 = vld [vmem:[#allocation3 + $0xc4] ss:$16 sps:$4 sm:$0xff]  }
 0x4ca   :  { %v1909_v58 = vadd.f32 %v870_v48, %v869_v54 }
 0x4cc   :  { %1402 = vtanh.f32 %v1909_v58 }
 0x4d9   :  { %v1403_v6 = vpop.eup %1402 }
 0x4da   :  { %v873_v7 = vmul.f32 %v1403_v6, %v868_v5 }
 0x4dc   :  { %v889_v8 = vpack.c.bf16 %v873_v7, %v873_v7 }
 0x4de   :  { %923 = vmatmul.mubr.bf16.vlgmr.msra.gmra.mxu0 %v889_v8  ;;  %964 = vmatmul.mubr.bf16.vlgmr.msra.gmra.mxu1 %v889_v8  ;;  %v1448_v8 = vld [vmem:[#allocation3 + $0x80] ss:$16 sps:$4 sm:$0xff]  }
 0x4df   :  { %1011 = vmatpush1.bf16.msra.mxu0 %v1912_v9  ;;  %1052 = vmatpush1.bf16.msra.mxu1 %v1915_v10 }
 0x4e0   :  { %1012 = vmatprep.subr.bf16.mxu0 %v1918_v39  ;;  %1053 = vmatprep.subr.bf16.mxu1 %v1921_v11 }
 0x4e1   :  { %1042 = vmatprep.mubr.bf16.mxu0 %v1491_v1  ;;  %1083 = vmatprep.mubr.bf16.mxu1 %v1491_v1 }
 0x4e3   :  { %1013 = vmatpush1.bf16.msra.mxu0 %v1926_v12  ;;  %1054 = vmatpush1.bf16.msra.mxu1 %v1929_v13 }
 0x4e4   :  { %1014 = vmatprep.subr.bf16.mxu0 %v1932_v14  ;;  %1055 = vmatprep.subr.bf16.mxu1 %v1935_v59 }
 0x4e7   :  { %1015 = vmatpush1.bf16.msra.mxu0 %v1938_v2  ;;  %1056 = vmatpush1.bf16.msra.mxu1 %v1941_v28 }
 0x4e8   :  { %1016 = vmatprep.subr.bf16.mxu0 %v1944_v3  ;;  %1057 = vmatprep.subr.bf16.mxu1 %v1573_v15  ;;  %v1445_v15 = vld [vmem:[#allocation3 + $0xe4] ss:$16 sps:$4 sm:$0xff]  }
 0x4eb   :  { %1017 = vmatpush1.bf16.msra.mxu0 %v1575_v16  ;;  %1058 = vmatpush1.bf16.msra.mxu1 %v1579_v17  ;;  %v1446_v16 = vld [vmem:[#allocation3 + $0xec] ss:$16 sps:$4 sm:$0xff]   ;;  %v879_v17 = vpop.permute.xlu1 %878 }
 0x4ec   :  { %1018 = vmatprep.subr.bf16.mxu0 %v1581_v18  ;;  %1059 = vmatprep.subr.bf16.mxu1 %v1585_v19  ;;  %v881_v18 = vmul.f32 %v879_v17, %v1686_v43  ;;  %v882_v19 = vmul.f32 %v879_v17, %v1691_v46  ;;  %v884_v37 = vmul.f32 %v879_v17, %v1706_v61 }
 0x4ee   :  { %v888_v47 = vadd.f32 %v884_v37, %v1710_v40 }
 0x4ef   :  { %1019 = vmatpush1.bf16.msra.mxu0 %v1587_v20  ;;  %1060 = vmatpush1.bf16.msra.mxu1 %v1589_v21  ;;  %v885_v20 = vadd.f32 %v881_v18, %v1694_v49  ;;  %v1464_v18 = vld [vmem:[#allocation3] ss:$16 sps:$4 sm:$0xff]  }
 0x4f0   :  { %1020 = vmatprep.subr.bf16.mxu0 %v1593_v22  ;;  %1061 = vmatprep.subr.bf16.mxu1 %v1597_v23 }
 0x4f3   :  { %1021 = vmatpush1.bf16.msra.mxu0 %v1601_v24  ;;  %1062 = vmatpush1.bf16.msra.mxu1 %v1603_v25  ;;  %v883_v24 = vmul.f32 %v879_v17, %v1696_v50  ;;  %v886_v25 = vadd.f32 %v882_v19, %v1699_v52  ;;  %v1463_v17 = vld [vmem:[#allocation3 + $0xc] ss:$16 sps:$4 sm:$0xff]   ;;  %v1465_v19 = vld [vmem:[#allocation3 + $0x8] ss:$16 sps:$4 sm:$0xff]  }
 0x4f4   :  { %1022 = vmatprep.subr.bf16.mxu0 %v1607_v26  ;;  %1063 = vmatprep.subr.bf16.mxu1 %v1609_v27 }
 0x4f7   :  { %1023 = vmatpush1.bf16.msra.mxu0 %v1619_v30  ;;  %1064 = vmatpush1.bf16.msra.mxu1 %v1621_v31 }
 0x4f8   :  { %1024 = vmatprep.subr.bf16.mxu0 %v1625_v32  ;;  %1065 = vmatprep.subr.bf16.mxu1 %v1627_v33 }
 0x4fb   :  { %1025 = vmatpush1.bf16.msra.mxu0 %v1634_v35  ;;  %1066 = vmatpush1.bf16.msra.mxu1 %v1636_v36  ;;  %v887_v35 = vadd.f32 %v883_v24, %v1703_v56 }
 0x4fc   :  { %1130 = vmatprep.subr.bf16.mxu0 %v1445_v15  ;;  %1171 = vmatprep.subr.bf16.mxu1 %v1446_v16  ;;  %v1461_v15 = vld [vmem:[#allocation3 + $0x28] ss:$16 sps:$4 sm:$0xff]   ;;  %v1462_v16 = vld [vmem:[#allocation3 + $0x4] ss:$16 sps:$4 sm:$0xff]  }
 0x59e   :  { %v924_v21 = vpop.f32.mrf.mxu0  ;;  %v965_v22 = vpop.f32.mrf.mxu1 }
 0x59f   :  { %v972_v23 = vadd.f32 %v924_v21, %v885_v20  ;;  %v974_v34 = vadd.f32 %v965_v22, %v887_v35  ;;  %v999_v20 = vpop.permute.xlu0 %998 }
 0x5a0   :  { %v926_v26 = vpop.f32.mrf.mxu0  ;;  %v967_v27 = vpop.f32.mrf.mxu1  ;;  %v1001_v21 = vmul.f32 %v999_v20, %v1686_v43  ;;  %v1002_v22 = vmul.f32 %v999_v20, %v1691_v46 }
 0x5a1   :  { %v976_v30 = vmul.f32 0.5, %v972_v23  ;;  %v973_v31 = vadd.f32 %v926_v26, %v886_v25  ;;  %v975_v63 = vadd.f32 %v967_v27, %v888_v47  ;;  %v1003_v27 = vmul.f32 %v999_v20, %v1696_v50 }
 0x5a2   :  { %v928_v32 = vpop.f32.mrf.mxu0  ;;  %v969_v33 = vpop.f32.mrf.mxu1  ;;  %v1005_v23 = vadd.f32 %v1001_v21, %v1694_v49 }
 0x5a3   :  { %1404 = vtanh.f32 %v976_v30  ;;  %v980_v36 = vmul.f32 0.5, %v973_v31  ;;  %v985_v38 = vmul.f32 0.5, %v975_v63  ;;  %v1006_v30 = vadd.f32 %v1002_v22, %v1699_v52 }
 0x5a4   :  { %v929_v0 = vpop.f32.mrf.mxu0  ;;  %v970_v41 = vpop.f32.mrf.mxu1 }
 0x5a5   :  { %1406 = vtanh.f32 %v980_v36  ;;  %v1007_v41 = vadd.f32 %v1003_v27, %v1703_v56 }
 0x5a6   :  { %1408 = vtanh.f32 %v974_v34 }
 0x5a7   :  { %1410 = vtanh.f32 %v985_v38  ;;  %v1004_v38 = vmul.f32 %v999_v20, %v1706_v61 }
 0x5b0   :  { %v1405_v42 = vpop.eup %1404 }
 0x5b1   :  { %v978_v53 = vadd.f32 1.0, %v1405_v42  ;;  %v1008_v42 = vadd.f32 %v1004_v38, %v1710_v40 }
 0x5b2   :  { %v1407_v55 = vpop.eup %1406 }
 0x5b3   :  { %v979_v51 = vmul.f32 0.5, %v978_v53  ;;  %v982_v45 = vadd.f32 1.0, %v1407_v55  ;;  %v1409_v29 = vpop.eup %1408 }
 0x5b4   :  { %v1411_v48 = vpop.eup %1410 }
 0x5b5   :  { %v983_v60 = vmul.f32 0.5, %v982_v45  ;;  %v990_v62 = vmul.f32 %v1409_v29, %v979_v51  ;;  %v987_v44 = vadd.f32 1.0, %v1411_v48 }
 0x5b7   :  { %v989_v57 = vmul.f32 %v983_v60, %v1909_v58  ;;  %v988_v4 = vmul.f32 0.5, %v987_v44  ;;  %v1447_v58 = vld [vmem:[#allocation3 + $0x8c] ss:$16 sps:$4 sm:$0xff]  }
 0x5b9   :  { %v1975_v54 = vadd.f32 %v990_v62, %v989_v57 }
 0x5bb   :  { %1412 = vtanh.f32 %v1975_v54 }
 0x5c8   :  { %v1413_v5 = vpop.eup %1412 }
 0x5c9   :  { %v993_v6 = vmul.f32 %v1413_v5, %v988_v4 }
 0x5cb   :  { %v1009_v7 = vpack.c.bf16 %v993_v6, %v993_v6 }
 0x5cd   :  { %1043 = vmatmul.mubr.bf16.vlgmr.msra.gmra.mxu0 %v1009_v7  ;;  %1084 = vmatmul.mubr.bf16.vlgmr.msra.gmra.mxu1 %v1009_v7 }
 0x5ce   :  { %1131 = vmatpush1.bf16.msra.mxu0 %v1912_v9  ;;  %1172 = vmatpush1.bf16.msra.mxu1 %v1915_v10  ;;  %v1449_v9 = vld [vmem:[#allocation3 + $0x88] ss:$16 sps:$4 sm:$0xff]   ;;  %v1451_v10 = vld [vmem:[#allocation3 + $0x6c] ss:$16 sps:$4 sm:$0xff]  }
 0x5cf   :  { %1132 = vmatprep.subr.bf16.mxu0 %v1918_v39  ;;  %1173 = vmatprep.subr.bf16.mxu1 %v1921_v11  ;;  %v1452_v39 = vld [vmem:[#allocation3 + $0x60] ss:$16 sps:$4 sm:$0xff]   ;;  %v1453_v11 = vld [vmem:[#allocation3 + $0x68] ss:$16 sps:$4 sm:$0xff]  }
 0x5d0   :  { %1162 = vmatprep.mubr.bf16.mxu0 %v1491_v1  ;;  %1203 = vmatprep.mubr.bf16.mxu1 %v1491_v1  ;;  %v1450_v1 = vld [vmem:[#allocation3 + $0x64] ss:$16 sps:$4 sm:$0xff]  }
 0x5d2   :  { %1133 = vmatpush1.bf16.msra.mxu0 %v1926_v12  ;;  %1174 = vmatpush1.bf16.msra.mxu1 %v1929_v13  ;;  %v1454_v12 = vld [vmem:[#allocation3 + $0x44] ss:$16 sps:$4 sm:$0xff]   ;;  %v1455_v13 = vld [vmem:[#allocation3 + $0x4c] ss:$16 sps:$4 sm:$0xff]  }
 0x5d3   :  { %1134 = vmatprep.subr.bf16.mxu0 %v1932_v14  ;;  %1175 = vmatprep.subr.bf16.mxu1 %v1935_v59  ;;  %v1456_v14 = vld [vmem:[#allocation3 + $0x40] ss:$16 sps:$4 sm:$0xff]   ;;  %v1457_v59 = vld [vmem:[#allocation3 + $0x48] ss:$16 sps:$4 sm:$0xff]  }
 0x5d6   :  { %1135 = vmatpush1.bf16.msra.mxu0 %v1938_v2  ;;  %1176 = vmatpush1.bf16.msra.mxu1 %v1941_v28  ;;  %v1458_v2 = vld [vmem:[#allocation3 + $0x24] ss:$16 sps:$4 sm:$0xff]   ;;  %v1459_v28 = vld [vmem:[#allocation3 + $0x2c] ss:$16 sps:$4 sm:$0xff]  }
 0x5d7   :  { %1136 = vmatprep.subr.bf16.mxu0 %v1944_v3  ;;  %1177 = vmatprep.subr.bf16.mxu1 %v1447_v58  ;;  %v1460_v3 = vld [vmem:[#allocation3 + $0x20] ss:$16 sps:$4 sm:$0xff]  }
 0x5da   :  { %1137 = vmatpush1.bf16.msra.mxu0 %v1448_v8  ;;  %1178 = vmatpush1.bf16.msra.mxu1 %v1449_v9 }
 0x5db   :  { %1138 = vmatprep.subr.bf16.mxu0 %v1450_v1  ;;  %1179 = vmatprep.subr.bf16.mxu1 %v1451_v10  ;;  %v1119_v10 = vpop.permute.xlu1 %1118 }
 0x5de   :  { %1139 = vmatpush1.bf16.msra.mxu0 %v1452_v39  ;;  %1180 = vmatpush1.bf16.msra.mxu1 %v1453_v11  ;;  %v1121_v39 = vmul.f32 %v1119_v10, %v1686_v43  ;;  %v1122_v11 = vmul.f32 %v1119_v10, %v1691_v46 }
 0x5df   :  { %1140 = vmatprep.subr.bf16.mxu0 %v1454_v12  ;;  %1181 = vmatprep.subr.bf16.mxu1 %v1455_v13 }
 0x5e0   :  { %v1125_v12 = vadd.f32 %v1121_v39, %v1694_v49  ;;  %v1124_v49 = vmul.f32 %v1119_v10, %v1706_v61 }
 0x5e2   :  { %1141 = vmatpush1.bf16.msra.mxu0 %v1456_v14  ;;  %1182 = vmatpush1.bf16.msra.mxu1 %v1457_v59  ;;  %v1123_v14 = vmul.f32 %v1119_v10, %v1696_v50  ;;  %v1128_v50 = vadd.f32 %v1124_v49, %v1710_v40  ;;  %v1298_v40 = vld [vmem:[%s2018_s4] ss:$0 sm:$0xff] }
 0x5e3   :  { %1142 = vmatprep.subr.bf16.mxu0 %v1458_v2  ;;  %1183 = vmatprep.subr.bf16.mxu1 %v1459_v28  ;;  %v1126_v2 = vadd.f32 %v1122_v11, %v1699_v52 }
 0x5e4   :  { %v1127_v43 = vadd.f32 %v1123_v14, %v1703_v56 }
 0x5e6   :  { %1143 = vmatpush1.bf16.msra.mxu0 %v1460_v3  ;;  %1184 = vmatpush1.bf16.msra.mxu1 %v1461_v15 }
 0x5e7   :  { %1144 = vmatprep.subr.bf16.mxu0 %v1462_v16  ;;  %1185 = vmatprep.subr.bf16.mxu1 %v1463_v17 }
 0x5ea   :  { %1145 = vmatpush1.bf16.msra.mxu0 %v1464_v18  ;;  %1186 = vmatpush1.bf16.msra.mxu1 %v1465_v19 }
 0x68d   :  { %v1044_v24 = vpop.f32.mrf.mxu0  ;;  %v1085_v25 = vpop.f32.mrf.mxu1 }
 0x68e   :  { %v1092_v26 = vadd.f32 %v1044_v24, %v1005_v23  ;;  %v1094_v63 = vadd.f32 %v1085_v25, %v1007_v41 }
 0x68f   :  { %v1046_v31 = vpop.f32.mrf.mxu0  ;;  %v1087_v32 = vpop.f32.mrf.mxu1 }
 0x690   :  { %v1096_v33 = vmul.f32 0.5, %v1092_v26  ;;  %v1093_v35 = vadd.f32 %v1046_v31, %v1006_v30  ;;  %v1095_v53 = vadd.f32 %v1087_v32, %v1008_v42 }
 0x691   :  { %v1048_v36 = vpop.f32.mrf.mxu0  ;;  %v1089_v0 = vpop.f32.mrf.mxu1 }
 0x692   :  { %1414 = vtanh.f32 %v1096_v33  ;;  %v1100_v34 = vmul.f32 0.5, %v1093_v35  ;;  %v1105_v55 = vmul.f32 0.5, %v1095_v53 }
 0x693   :  { %v1049_v37 = vpop.f32.mrf.mxu0  ;;  %v1090_v47 = vpop.f32.mrf.mxu1 }
 0x694   :  { %1416 = vtanh.f32 %v1100_v34  ;;  %v1299_v37 = vld [vmem:[#allocation2] ss:$0 sm:$0xff] }
 0x695   :  { %1418 = vtanh.f32 %v1094_v63 }
 0x696   :  { %1420 = vtanh.f32 %v1105_v55 }
 0x69f   :  { %v1415_v51 = vpop.eup %1414 }
 0x6a0   :  { %v1098_v45 = vadd.f32 1.0, %v1415_v51 }
 0x6a1   :  { %v1417_v60 = vpop.eup %1416 }
 0x6a2   :  { %v1099_v29 = vmul.f32 0.5, %v1098_v45  ;;  %v1102_v57 = vadd.f32 1.0, %v1417_v60  ;;  %v1419_v48 = vpop.eup %1418 }
 0x6a3   :  { %v1421_v6 = vpop.eup %1420 }
 0x6a4   :  { %v1103_v62 = vmul.f32 0.5, %v1102_v57  ;;  %v1110_v4 = vmul.f32 %v1419_v48, %v1099_v29  ;;  %v1107_v7 = vadd.f32 1.0, %v1421_v6 }
 0x6a6   :  { %v1109_v44 = vmul.f32 %v1103_v62, %v1975_v54  ;;  %v1108_v58 = vmul.f32 0.5, %v1107_v7 }
 0x6a8   :  { %v1111_v5 = vadd.f32 %v1110_v4, %v1109_v44 }
 0x6aa   :  { %1422 = vtanh.f32 %v1111_v5 }
 0x6b7   :  { %v1423_v8 = vpop.eup %1422 }
 0x6b8   :  { %v1113_v9 = vmul.f32 %v1423_v8, %v1108_v58 }
 0x6ba   :  { %v1129_v1 = vpack.c.bf16 %v1113_v9, %v1113_v9 }
 0x6bc   :  { %1163 = vmatmul.mubr.bf16.vlgmr.msra.gmra.mxu0 %v1129_v1  ;;  %1204 = vmatmul.mubr.bf16.vlgmr.msra.gmra.mxu1 %v1129_v1 }
 0x77c   :  { %v1164_v13 = vpop.f32.mrf.mxu0  ;;  %v1205_v54 = vpop.f32.mrf.mxu1 }
 0x77d   :  { %v1212_v59 = vadd.f32 %v1164_v13, %v1125_v12  ;;  %v1214_v21 = vadd.f32 %v1205_v54, %v1127_v43 }
 0x77e   :  { %v1166_v28 = vpop.f32.mrf.mxu0  ;;  %v1207_v3 = vpop.f32.mrf.mxu1 }
 0x77f   :  { %v1216_v15 = vmul.f32 0.5, %v1212_v59  ;;  %v1213_v16 = vadd.f32 %v1166_v28, %v1126_v2  ;;  %v1215_v52 = vadd.f32 %v1207_v3, %v1128_v50 }
 0x780   :  { %v1168_v17 = vpop.f32.mrf.mxu0  ;;  %v1209_v18 = vpop.f32.mrf.mxu1 }
 0x781   :  { %1424 = vtanh.f32 %v1216_v15  ;;  %v1220_v19 = vmul.f32 0.5, %v1213_v16  ;;  %v1225_v22 = vmul.f32 0.5, %v1215_v52 }
 0x782   :  { %v1169_v46 = vpop.f32.mrf.mxu0  ;;  %v1210_v20 = vpop.f32.mrf.mxu1 }
 0x783   :  { %1426 = vtanh.f32 %v1220_v19 }
 0x784   :  { %1428 = vtanh.f32 %v1214_v21 }
 0x785   :  { %1430 = vtanh.f32 %v1225_v22 }
 0x78e   :  { %v1425_v23 = vpop.eup %1424 }
 0x78f   :  { %v1218_v24 = vadd.f32 1.0, %v1425_v23 }
 0x790   :  { %v1427_v25 = vpop.eup %1426 }
 0x791   :  { %v1219_v26 = vmul.f32 0.5, %v1218_v24  ;;  %v1222_v27 = vadd.f32 1.0, %v1427_v25  ;;  %v1429_v56 = vpop.eup %1428 }
 0x792   :  { %v1431_v61 = vpop.eup %1430 }
 0x793   :  { %v1223_v30 = vmul.f32 0.5, %v1222_v27  ;;  %v1230_v32 = vmul.f32 %v1429_v56, %v1219_v26  ;;  %v1227_v35 = vadd.f32 1.0, %v1431_v61 }
 0x795   :  { %v1229_v31 = vmul.f32 %v1223_v30, %v1111_v5  ;;  %v1228_v36 = vmul.f32 0.5, %v1227_v35 }
 0x797   :  { %v1231_v33 = vadd.f32 %v1230_v32, %v1229_v31 }
 0x799   :  { %1432 = vtanh.f32 %v1231_v33 }
 0x7a6   :  { %v1433_v0 = vpop.eup %1432 }
 0x7a7   :  { %v1233_v41 = vmul.f32 %v1433_v0, %v1228_v36 }
 0x7a9   :  { %v1241_v34 = vmul.f32 %v1298_v40, %v1233_v41 }
 0x7ab   :  { %1242 = vadd.xlane.f32.xlu0 %v1241_v34 }
 0x834   :  { %v1243_v47 = vpop.xlane.xlu0 %1242 }
 0x835   :  { %v1251_v63 = vadd.f32 %v1299_v37, %v1243_v47 }
 0x837   :  { %1253 = vst.msk [vmem:[%s2020_s6] sm:$0xff] %vm1252_vm0, %v1251_v63 }
 0x838   :  { %1258 = vsyncpa [#allocation4], 1 }

</bundles_post_ra>
